<compile_context>
chip_gen: v5e
topology: v5e:2x2
jax: 0.10.0
libtpu: 0.0.40
codegen_flags: <defaults>
</compile_context>

<pallas_src>
import functools
import math

import jax
import jax.numpy as jnp
import numpy as np
from jax.experimental import pallas as pl
from jax.experimental.pallas import tpu as pltpu


# ----------------------------------------------------------------------------
# helpers
# ----------------------------------------------------------------------------
def _gen_timing_signal(length, channels, min_timescale=1.0, max_timescale=1.0e4):
    """Sinusoidal timing signal, identical to the torch `_gen_timing_signal`."""
    position = np.arange(length, dtype=np.float64)
    num_timescales = channels // 2
    log_timescale_increment = (
        math.log(float(max_timescale) / float(min_timescale))
        / max(float(num_timescales) - 1.0, 1.0))
    inv_timescales = min_timescale * np.exp(
        np.arange(num_timescales, dtype=np.float64) * -log_timescale_increment)
    scaled_time = position[:, None] * inv_timescales[None, :]
    signal = np.concatenate([np.sin(scaled_time), np.cos(scaled_time)], axis=1)
    signal = np.pad(signal, [[0, 0], [0, channels % 2]], mode="constant")
    return jnp.asarray(signal.reshape(1, length, channels), dtype=jnp.float32)


def _ln(x, gamma, beta, eps):
    """MoEL LayerNorm: gamma * (x - mean) / (std + eps) + beta (unbiased std)."""
    mean = jnp.mean(x, axis=-1, keepdims=True)
    d = x - mean
    var = jnp.sum(d * d, axis=-1, keepdims=True) / (x.shape[-1] - 1)
    return gamma * (d / (jnp.sqrt(var) + eps)) + beta


def _pick_batch_block(batch, seq_len, target_rows=256):
    """Largest divisor of `batch` such that nb * T is around target_rows."""
    nb = max(1, min(batch, max(1, target_rows // max(seq_len, 1))))
    while batch % nb:
        nb -= 1
    return max(nb, 1)


# ----------------------------------------------------------------------------
# fused encoder kernel: embed + timing, L pre-LN layers, final LayerNorm
# ----------------------------------------------------------------------------
def _encoder_kernel(inp_ref, w_emb_ref, timing_ref, mask_ref,
                    ln1_g_ref, ln1_b_ref,
                    wq_ref, wk_ref, wv_ref, wo_ref,
                    ln2_g_ref, ln2_b_ref,
                    w1_ref, b1_ref, w2_ref, b2_ref,
                    lnf_g_ref, lnf_b_ref,
                    out_ref,
                    ctx_ref,                 # VMEM scratch (nb*T, VD) f32
                    *, num_heads: int, eps: float):
    l = pl.program_id(1)
    num_l = pl.num_programs(1)

    nb, T, H = out_ref.shape
    R = nb * T
    E = inp_ref.shape[2]
    KD = wq_ref.shape[2]
    VD = wv_ref.shape[2]
    dh_k = KD // num_heads
    dh_v = VD // num_heads

    # ---- layer 0: embedding projection + timing signal ----------------------
    @pl.when(l == 0)
    def _():
        inp = inp_ref[...].reshape(R, E)
        x0 = jnp.dot(inp, w_emb_ref[...], preferred_element_type=jnp.float32)
        out_ref[...] = x0.reshape(nb, T, H) + timing_ref[...]

    # activation is resident in the output block across the layer axis
    x = out_ref[...].reshape(R, H)
    add_mask = mask_ref[...]                       # (nb, 1, T) additive pad mask

    # ---- pre-LN + multi-head self-attention ---------------------------------
    xn = _ln(x, ln1_g_ref[0], ln1_b_ref[0], eps)
    # 1/sqrt(d_head) query scale is folded into Wq at parameter-prep time.
    q = jnp.dot(xn, wq_ref[0], preferred_element_type=jnp.float32)
    k = jnp.dot(xn, wk_ref[0], preferred_element_type=jnp.float32)
    v = jnp.dot(xn, wv_ref[0], preferred_element_type=jnp.float32)
    q3 = q.reshape(nb, T, KD)
    k3 = k.reshape(nb, T, KD)
    v3 = v.reshape(nb, T, VD)

    # num_heads is small (2 in this module); contexts go to the VMEM scratch so
    # per-head (T, T) intermediates die before the next head.
    for h in range(num_heads):
        k0, k1 = h * dh_k, (h + 1) * dh_k
        v0, v1 = h * dh_v, (h + 1) * dh_v
        qh = q3[:, :, k0:k1]
        kh = k3[:, :, k0:k1]
        vh = v3[:, :, v0:v1]
        logits = jnp.einsum("bqd,bkd->bqk", qh, kh,
                            preferred_element_type=jnp.float32) + add_mask
        m = jnp.max(logits, axis=-1, keepdims=True)
        e = jnp.exp(logits - m)
        denom = jnp.sum(e, axis=-1, keepdims=True)
        p = e * pl.reciprocal(denom, approx=False)
        ctx_h = jnp.einsum("bqk,bkd->bqd", p, vh,
                           preferred_element_type=jnp.float32)
        ctx_ref[:, v0:v1] = ctx_h.reshape(R, dh_v)

    # single full-K output projection: (nb*T, VD) @ (VD, H)
    attn = jnp.dot(ctx_ref[...], wo_ref[0], preferred_element_type=jnp.float32)
    x = x + attn                                   # residual (layer_dropout = 0)

    # ---- pre-LN + positionwise FFN -------------------------------------------
    xn2 = _ln(x, ln2_g_ref[0], ln2_b_ref[0], eps)
    hid = jnp.maximum(
        jnp.dot(xn2, w1_ref[0], preferred_element_type=jnp.float32) + b1_ref[0],
        0.0)
    ffn = jnp.dot(hid, w2_ref[0], preferred_element_type=jnp.float32) + b2_ref[0]
    x = x + ffn                                    # residual

    # ---- write back; fuse final LayerNorm into the last layer ----------------
    @pl.when(l < num_l - 1)
    def _():
        out_ref[...] = x.reshape(nb, T, H)

    @pl.when(l == num_l - 1)
    def _():
        y = _ln(x, lnf_g_ref[...], lnf_b_ref[...], eps)
        out_ref[...] = y.reshape(nb, T, H)


# ----------------------------------------------------------------------------
# wrapper
# ----------------------------------------------------------------------------
def emotion_encoder_forward(inputs, mask, params, *, num_heads, eps=1e-6):
    """inputs: (B, T, E) f32; mask: (B, T) bool, True = PAD position."""
    B, T, E = inputs.shape
    H = params["w_emb"].shape[1]
    layers = params["layers"]
    num_layers = len(layers)
    KD = layers[0]["wq"].shape[1]
    VD = layers[0]["wv"].shape[1]
    F = layers[0]["w1"].shape[1]
    dh_k = KD // num_heads
    scale = float(dh_k) ** -0.5

    # Stack per-layer weights with a leading L axis so one grid axis streams
    # them; fold the per-head query scale into Wq.
    def stk(name):
        return jnp.stack([lp[name] for lp in layers], axis=0)

    wq_s = stk("wq") * scale
    wk_s, wv_s, wo_s = stk("wk"), stk("wv"), stk("wo")
    ln1_g, ln1_b = stk("ln1_g"), stk("ln1_b")
    ln2_g, ln2_b = stk("ln2_g"), stk("ln2_b")
    w1_s, b1_s = stk("w1"), stk("b1")
    w2_s, b2_s = stk("w2"), stk("b2")

    timing = params["timing"][:, :T, :]                                   # (1, T, H)
    add_mask = jnp.where(mask[:, None, :], -1e18, 0.0).astype(jnp.float32)  # (B, 1, T)

    nb = _pick_batch_block(B, T)
    R = nb * T

    kernel = functools.partial(_encoder_kernel,
                               num_heads=int(num_heads), eps=float(eps))

    out = pl.pallas_call(
        kernel,
        out_shape=jax.ShapeDtypeStruct((B, T, H), jnp.float32),
        grid=(B // nb, num_layers),
        in_specs=[
            pl.BlockSpec((nb, T, E), lambda bi, l: (bi, 0, 0)),   # inputs
            pl.BlockSpec((E, H),     lambda bi, l: (0, 0)),       # W_emb
            pl.BlockSpec((1, T, H),  lambda bi, l: (0, 0, 0)),    # timing signal
            pl.BlockSpec((nb, 1, T), lambda bi, l: (bi, 0, 0)),   # additive pad mask
            pl.BlockSpec((1, 1, H),  lambda bi, l: (l, 0, 0)),    # ln1 gamma
            pl.BlockSpec((1, 1, H),  lambda bi, l: (l, 0, 0)),    # ln1 beta
            pl.BlockSpec((1, H, KD), lambda bi, l: (l, 0, 0)),    # Wq (scale folded)
            pl.BlockSpec((1, H, KD), lambda bi, l: (l, 0, 0)),    # Wk
            pl.BlockSpec((1, H, VD), lambda bi, l: (l, 0, 0)),    # Wv
            pl.BlockSpec((1, VD, H), lambda bi, l: (l, 0, 0)),    # Wo
            pl.BlockSpec((1, 1, H),  lambda bi, l: (l, 0, 0)),    # ln2 gamma
            pl.BlockSpec((1, 1, H),  lambda bi, l: (l, 0, 0)),    # ln2 beta
            pl.BlockSpec((1, H, F),  lambda bi, l: (l, 0, 0)),    # W1
            pl.BlockSpec((1, 1, F),  lambda bi, l: (l, 0, 0)),    # b1
            pl.BlockSpec((1, F, H),  lambda bi, l: (l, 0, 0)),    # W2
            pl.BlockSpec((1, 1, H),  lambda bi, l: (l, 0, 0)),    # b2
            pl.BlockSpec((1, H),     lambda bi, l: (0, 0)),       # final LN gamma
            pl.BlockSpec((1, H),     lambda bi, l: (0, 0)),       # final LN beta
        ],
        out_specs=pl.BlockSpec((nb, T, H), lambda bi, l: (bi, 0, 0)),
        scratch_shapes=[pltpu.VMEM((R, VD), jnp.float32)],
        compiler_params=pltpu.CompilerParams(
            dimension_semantics=("parallel", "arbitrary")),
    )(inputs, params["w_emb"], timing, add_mask,
      ln1_g, ln1_b, wq_s, wk_s, wv_s, wo_s,
      ln2_g, ln2_b, w1_s, b1_s, w2_s, b2_s,
      params["ln_g"], params["ln_b"])
    return out


# ----------------------------------------------------------------------------
# plain-JAX reference (mirrors the torch forward)
# ----------------------------------------------------------------------------
def _ref_mha(xn, add_mask, lp, num_heads):
    kd = lp["wq"].shape[1]
    vd = lp["wv"].shape[1]
    dh_k = kd // num_heads
    dh_v = vd // num_heads
    q = (xn @ lp["wq"]) * (float(dh_k) ** -0.5)
    k = xn @ lp["wk"]
    v = xn @ lp["wv"]
    out = 0.0
    for h in range(num_heads):
        qh = q[..., h * dh_k:(h + 1) * dh_k]
        kh = k[..., h * dh_k:(h + 1) * dh_k]
        vh = v[..., h * dh_v:(h + 1) * dh_v]
        logits = jnp.einsum("btd,bsd->bts", qh, kh) + add_mask
        p = jax.nn.softmax(logits, axis=-1)
        ctx = jnp.einsum("bts,bsd->btd", p, vh)
        out = out + ctx @ lp["wo"][h * dh_v:(h + 1) * dh_v, :]
    return out


def emotion_encoder_reference(inputs, mask, params, *, num_heads, eps=1e-6):
    B, T, E = inputs.shape
    x = inputs @ params["w_emb"] + params["timing"][:, :T, :]
    add_mask = jnp.where(mask[:, None, :], -1e18, 0.0).astype(jnp.float32)
    for lp in params["layers"]:
        xn = _ln(x, lp["ln1_g"], lp["ln1_b"], eps)
        x = x + _ref_mha(xn, add_mask, lp, num_heads)
        xn2 = _ln(x, lp["ln2_g"], lp["ln2_b"], eps)
        ffn = jax.nn.relu(xn2 @ lp["w1"] + lp["b1"]) @ lp["w2"] + lp["b2"]
        x = x + ffn
    return _ln(x, params["ln_g"], params["ln_b"], eps)


# ----------------------------------------------------------------------------
# demo / self-test
# ----------------------------------------------------------------------------
if __name__ == "__main__":
    B, T = 2, 8
    E, H = 32, 32            # embedding_size, hidden_size
    num_layers, num_heads = 2, 2
    KD = VD = 32             # total_key_depth / total_value_depth
    F = 64                   # filter_size
    max_length = 64
    eps = 1e-6

    key = jax.random.PRNGKey(0)
    k_iter = iter(jax.random.split(key, 64))

    def nxt():
        return next(k_iter)

    def linear(k, fan_in, shape):
        bound = 1.0 / math.sqrt(fan_in)
        return jax.random.uniform(k, shape, jnp.float32, -bound, bound)

    inputs = jax.random.normal(nxt(), (B, T, E), dtype=jnp.float32)
    lengths = jnp.array([T, T - 3], dtype=jnp.int32)
    mask = jnp.arange(T)[None, :] >= lengths[:, None]         # (B, T) True = PAD

    layers = []
    for _ in range(num_layers):
        layers.append(dict(
            ln1_g=1.0 + 0.1 * jax.random.normal(nxt(), (1, H), jnp.float32),
            ln1_b=0.1 * jax.random.normal(nxt(), (1, H), jnp.float32),
            wq=linear(nxt(), H, (H, KD)),
            wk=linear(nxt(), H, (H, KD)),
            wv=linear(nxt(), H, (H, VD)),
            wo=linear(nxt(), VD, (VD, H)),
            ln2_g=1.0 + 0.1 * jax.random.normal(nxt(), (1, H), jnp.float32),
            ln2_b=0.1 * jax.random.normal(nxt(), (1, H), jnp.float32),
            w1=linear(nxt(), H, (H, F)),
            b1=linear(nxt(), H, (1, F)),
            w2=linear(nxt(), F, (F, H)),
            b2=linear(nxt(), F, (1, H)),
        ))

    params = dict(
        w_emb=linear(nxt(), E, (E, H)),
        timing=_gen_timing_signal(max_length, H),
        layers=layers,
        ln_g=1.0 + 0.1 * jax.random.normal(nxt(), (1, H), jnp.float32),
        ln_b=0.1 * jax.random.normal(nxt(), (1, H), jnp.float32),
    )

    out = emotion_encoder_forward(inputs, mask, params, num_heads=num_heads, eps=eps)
    out = jax.block_until_ready(out)

    ref = emotion_encoder_reference(inputs, mask, params, num_heads=num_heads, eps=eps)
    np.testing.assert_allclose(np.asarray(out), np.asarray(ref), rtol=1e-3, atol=1e-3)

    print("KERNEL_OK")
</pallas_src>

<mosaic_0001>
module attributes {stable_mosaic.version = 11 : i64} {
  func.func @_encoder_kernel(%arg0: i32, %arg1: i32, %arg2: memref<2x8x32xf32, #tpu.memory_space<vmem>>, %arg3: memref<32x32xf32, #tpu.memory_space<vmem>>, %arg4: memref<1x8x32xf32, #tpu.memory_space<vmem>>, %arg5: memref<2x1x8xf32, #tpu.memory_space<vmem>>, %arg6: memref<1x1x32xf32, #tpu.memory_space<vmem>>, %arg7: memref<1x1x32xf32, #tpu.memory_space<vmem>>, %arg8: memref<1x32x32xf32, #tpu.memory_space<vmem>>, %arg9: memref<1x32x32xf32, #tpu.memory_space<vmem>>, %arg10: memref<1x32x32xf32, #tpu.memory_space<vmem>>, %arg11: memref<1x32x32xf32, #tpu.memory_space<vmem>>, %arg12: memref<1x1x32xf32, #tpu.memory_space<vmem>>, %arg13: memref<1x1x32xf32, #tpu.memory_space<vmem>>, %arg14: memref<1x32x64xf32, #tpu.memory_space<vmem>>, %arg15: memref<1x1x64xf32, #tpu.memory_space<vmem>>, %arg16: memref<1x64x32xf32, #tpu.memory_space<vmem>>, %arg17: memref<1x1x32xf32, #tpu.memory_space<vmem>>, %arg18: memref<1x32xf32, #tpu.memory_space<vmem>>, %arg19: memref<1x32xf32, #tpu.memory_space<vmem>>, %arg20: memref<2x8x32xf32, #tpu.memory_space<vmem>>, %arg21: memref<16x32xf32, #tpu.memory_space<vmem>>) attributes {dimension_semantics = [#tpu.dimension_semantics<parallel>, #tpu.dimension_semantics<arbitrary>], iteration_bounds = array<i64: 1, 2>, scalar_prefetch = 0 : i64, scratch_operands = 1 : i64, tpu.core_type = #tpu.core_type<tc>, window_params = [{transform_indices = @transform_0, window_bounds = array<i64: 2, 8, 32>}, {pipeline_mode = #tpu.pipeline_mode<synchronous>, transform_indices = @transform_1, window_bounds = array<i64: 32, 32>}, {pipeline_mode = #tpu.pipeline_mode<synchronous>, transform_indices = @transform_2, window_bounds = array<i64: 1, 8, 32>}, {transform_indices = @transform_3, window_bounds = array<i64: 2, 1, 8>}, {transform_indices = @transform_4, window_bounds = array<i64: 1, 1, 32>}, {transform_indices = @transform_5, window_bounds = array<i64: 1, 1, 32>}, {transform_indices = @transform_6, window_bounds = array<i64: 1, 32, 32>}, {transform_indices = @transform_7, window_bounds = array<i64: 1, 32, 32>}, {transform_indices = @transform_8, window_bounds = array<i64: 1, 32, 32>}, {transform_indices = @transform_9, window_bounds = array<i64: 1, 32, 32>}, {transform_indices = @transform_10, window_bounds = array<i64: 1, 1, 32>}, {transform_indices = @transform_11, window_bounds = array<i64: 1, 1, 32>}, {transform_indices = @transform_12, window_bounds = array<i64: 1, 32, 64>}, {transform_indices = @transform_13, window_bounds = array<i64: 1, 1, 64>}, {transform_indices = @transform_14, window_bounds = array<i64: 1, 64, 32>}, {transform_indices = @transform_15, window_bounds = array<i64: 1, 1, 32>}, {pipeline_mode = #tpu.pipeline_mode<synchronous>, transform_indices = @transform_16, window_bounds = array<i64: 1, 32>}, {pipeline_mode = #tpu.pipeline_mode<synchronous>, transform_indices = @transform_17, window_bounds = array<i64: 1, 32>}, {transform_indices = @transform_18, window_bounds = array<i64: 2, 8, 32>}]} {
    %c0_i32 = arith.constant 0 : i32
    %0 = arith.cmpi eq, %arg1, %c0_i32 : i32
    %1 = arith.extui %0 : i1 to i32
    %c0_i32_0 = arith.constant 0 : i32
    %2 = arith.cmpi ne, %1, %c0_i32_0 : i32
    scf.if %2 {
      %c0_74 = arith.constant 0 : index
      %c0_75 = arith.constant 0 : index
      %c0_76 = arith.constant 0 : index
      %132 = vector.load %arg2[%c0_74, %c0_75, %c0_76] : memref<2x8x32xf32, #tpu.memory_space<vmem>>, vector<2x8x32xf32>
      %133 = vector.shape_cast %132 : vector<2x8x32xf32> to vector<16x32xf32>
      %c0_77 = arith.constant 0 : index
      %c0_78 = arith.constant 0 : index
      %134 = vector.load %arg3[%c0_77, %c0_78] : memref<32x32xf32, #tpu.memory_space<vmem>>, vector<32x32xf32>
      %cst_79 = arith.constant dense<0.000000e+00> : vector<16x32xf32>
      %135 = tpu.matmul %133, %134, %cst_79 {dimension_numbers = #tpu.dot_dimension_numbers<[1], [0], [0], [1], [0, 0, 1, 1], [], []>} : vector<16x32xf32>, vector<32x32xf32>, vector<16x32xf32> -> vector<16x32xf32>
      %136 = vector.shape_cast %135 : vector<16x32xf32> to vector<2x8x32xf32>
      %c0_80 = arith.constant 0 : index
      %c0_81 = arith.constant 0 : index
      %c0_82 = arith.constant 0 : index
      %137 = vector.load %arg4[%c0_80, %c0_81, %c0_82] : memref<1x8x32xf32, #tpu.memory_space<vmem>>, vector<1x8x32xf32>
      %138 = vector.broadcast %137 : vector<1x8x32xf32> to vector<2x8x32xf32>
      %139 = arith.addf %136, %138 : vector<2x8x32xf32>
      %c0_83 = arith.constant 0 : index
      %c0_84 = arith.constant 0 : index
      %c0_85 = arith.constant 0 : index
      %140 = vector.load %arg20[%c0_83, %c0_84, %c0_85] : memref<2x8x32xf32, #tpu.memory_space<vmem>>, vector<2x8x32xf32>
      tpu.vector_store %arg20[%c0_83, %c0_84, %c0_85], %139 {strides = array<i32>} : memref<2x8x32xf32, #tpu.memory_space<vmem>>, vector<2x8x32xf32>,
    } else {
    }
    %c0 = arith.constant 0 : index
    %c0_1 = arith.constant 0 : index
    %c0_2 = arith.constant 0 : index
    %3 = vector.load %arg20[%c0, %c0_1, %c0_2] : memref<2x8x32xf32, #tpu.memory_space<vmem>>, vector<2x8x32xf32>
    %4 = vector.shape_cast %3 : vector<2x8x32xf32> to vector<16x32xf32>
    %c0_3 = arith.constant 0 : index
    %c0_4 = arith.constant 0 : index
    %c0_5 = arith.constant 0 : index
    %5 = vector.load %arg5[%c0_3, %c0_4, %c0_5] : memref<2x1x8xf32, #tpu.memory_space<vmem>>, vector<2x1x8xf32>
    %c0_6 = arith.constant 0 : index
    %c0_7 = arith.constant 0 : index
    %c0_8 = arith.constant 0 : index
    %6 = vector.load %arg6[%c0_6, %c0_7, %c0_8] : memref<1x1x32xf32, #tpu.memory_space<vmem>>, vector<1x1x32xf32>
    %7 = vector.shape_cast %6 : vector<1x1x32xf32> to vector<1x32xf32>
    %c0_9 = arith.constant 0 : index
    %c0_10 = arith.constant 0 : index
    %c0_11 = arith.constant 0 : index
    %8 = vector.load %arg7[%c0_9, %c0_10, %c0_11] : memref<1x1x32xf32, #tpu.memory_space<vmem>>, vector<1x1x32xf32>
    %9 = vector.shape_cast %8 : vector<1x1x32xf32> to vector<1x32xf32>
    %cst = arith.constant dense<0.000000e+00> : vector<16xf32>
    %10 = vector.multi_reduction <add>, %4, %cst [1] : vector<16x32xf32> to vector<16xf32>
    %11 = vector.shape_cast %10 : vector<16xf32> to vector<16x1xf32>
    %cst_12 = arith.constant 3.200000e+01 : f32
    %12 = vector.broadcast %cst_12 : f32 to vector<16x1xf32>
    %13 = arith.divf %11, %12 : vector<16x1xf32>
    %14 = vector.broadcast %13 : vector<16x1xf32> to vector<16x32xf32>
    %15 = arith.subf %4, %14 : vector<16x32xf32>
    %16 = arith.mulf %15, %15 : vector<16x32xf32>
    %cst_13 = arith.constant dense<0.000000e+00> : vector<16xf32>
    %17 = vector.multi_reduction <add>, %16, %cst_13 [1] : vector<16x32xf32> to vector<16xf32>
    %18 = vector.shape_cast %17 : vector<16xf32> to vector<16x1xf32>
    %cst_14 = arith.constant 3.100000e+01 : f32
    %19 = vector.broadcast %cst_14 : f32 to vector<16x1xf32>
    %20 = arith.divf %18, %19 : vector<16x1xf32>
    %21 = math.sqrt %20 : vector<16x1xf32>
    %cst_15 = arith.constant 9.99999997E-7 : f32
    %22 = vector.broadcast %cst_15 : f32 to vector<16x1xf32>
    %23 = arith.addf %21, %22 : vector<16x1xf32>
    %24 = vector.broadcast %23 : vector<16x1xf32> to vector<16x32xf32>
    %25 = arith.divf %15, %24 : vector<16x32xf32>
    %26 = vector.broadcast %7 : vector<1x32xf32> to vector<16x32xf32>
    %27 = arith.mulf %26, %25 : vector<16x32xf32>
    %28 = vector.broadcast %9 : vector<1x32xf32> to vector<16x32xf32>
    %29 = arith.addf %27, %28 : vector<16x32xf32>
    %c0_16 = arith.constant 0 : index
    %c0_17 = arith.constant 0 : index
    %c0_18 = arith.constant 0 : index
    %30 = vector.load %arg8[%c0_16, %c0_17, %c0_18] : memref<1x32x32xf32, #tpu.memory_space<vmem>>, vector<1x32x32xf32>
    %31 = vector.shape_cast %30 : vector<1x32x32xf32> to vector<32x32xf32>
    %cst_19 = arith.constant dense<0.000000e+00> : vector<16x32xf32>
    %32 = tpu.matmul %29, %31, %cst_19 {dimension_numbers = #tpu.dot_dimension_numbers<[1], [0], [0], [1], [0, 0, 1, 1], [], []>} : vector<16x32xf32>, vector<32x32xf32>, vector<16x32xf32> -> vector<16x32xf32>
    %c0_20 = arith.constant 0 : index
    %c0_21 = arith.constant 0 : index
    %c0_22 = arith.constant 0 : index
    %33 = vector.load %arg9[%c0_20, %c0_21, %c0_22] : memref<1x32x32xf32, #tpu.memory_space<vmem>>, vector<1x32x32xf32>
    %34 = vector.shape_cast %33 : vector<1x32x32xf32> to vector<32x32xf32>
    %cst_23 = arith.constant dense<0.000000e+00> : vector<16x32xf32>
    %35 = tpu.matmul %29, %34, %cst_23 {dimension_numbers = #tpu.dot_dimension_numbers<[1], [0], [0], [1], [0, 0, 1, 1], [], []>} : vector<16x32xf32>, vector<32x32xf32>, vector<16x32xf32> -> vector<16x32xf32>
    %c0_24 = arith.constant 0 : index
    %c0_25 = arith.constant 0 : index
    %c0_26 = arith.constant 0 : index
    %36 = vector.load %arg10[%c0_24, %c0_25, %c0_26] : memref<1x32x32xf32, #tpu.memory_space<vmem>>, vector<1x32x32xf32>
    %37 = vector.shape_cast %36 : vector<1x32x32xf32> to vector<32x32xf32>
    %cst_27 = arith.constant dense<0.000000e+00> : vector<16x32xf32>
    %38 = tpu.matmul %29, %37, %cst_27 {dimension_numbers = #tpu.dot_dimension_numbers<[1], [0], [0], [1], [0, 0, 1, 1], [], []>} : vector<16x32xf32>, vector<32x32xf32>, vector<16x32xf32> -> vector<16x32xf32>
    %39 = vector.shape_cast %32 : vector<16x32xf32> to vector<2x8x32xf32>
    %40 = vector.shape_cast %35 : vector<16x32xf32> to vector<2x8x32xf32>
    %41 = vector.shape_cast %38 : vector<16x32xf32> to vector<2x8x32xf32>
    %42 = vector.extract_strided_slice %39 {offsets = [0, 0, 0], sizes = [2, 8, 16], strides = [1, 1, 1]} : vector<2x8x32xf32> to vector<2x8x16xf32>
    %43 = vector.extract_strided_slice %40 {offsets = [0, 0, 0], sizes = [2, 8, 16], strides = [1, 1, 1]} : vector<2x8x32xf32> to vector<2x8x16xf32>
    %44 = vector.extract_strided_slice %41 {offsets = [0, 0, 0], sizes = [2, 8, 16], strides = [1, 1, 1]} : vector<2x8x32xf32> to vector<2x8x16xf32>
    "tpu.trace_start"() <{level = 10 : i32, message = "bqd,bkd->bqk"}> : () -> ()
    %cst_28 = arith.constant dense<0.000000e+00> : vector<2x8x8xf32>
    %45 = tpu.matmul %42, %43, %cst_28 {dimension_numbers = #tpu.dot_dimension_numbers<[2], [2], [1], [1], [0, 0, 0, 1, 1, 1], [0], [0]>} : vector<2x8x16xf32>, vector<2x8x16xf32>, vector<2x8x8xf32> -> vector<2x8x8xf32>
    "tpu.trace_stop"() : () -> ()
    %46 = vector.broadcast %5 : vector<2x1x8xf32> to vector<2x8x8xf32>
    %47 = arith.addf %45, %46 : vector<2x8x8xf32>
    %cst_29 = arith.constant dense<0xFF800000> : vector<2x8xf32>
    %48 = vector.multi_reduction <maximumf>, %47, %cst_29 [2] : vector<2x8x8xf32> to vector<2x8xf32>
    %49 = vector.shape_cast %48 : vector<2x8xf32> to vector<2x8x1xf32>
    %50 = vector.broadcast %49 : vector<2x8x1xf32> to vector<2x8x8xf32>
    %51 = arith.subf %47, %50 : vector<2x8x8xf32>
    %52 = math.exp %51 : vector<2x8x8xf32>
    %cst_30 = arith.constant dense<0.000000e+00> : vector<2x8xf32>
    %53 = vector.multi_reduction <add>, %52, %cst_30 [2] : vector<2x8x8xf32> to vector<2x8xf32>
    %54 = vector.shape_cast %53 : vector<2x8xf32> to vector<2x8x1xf32>
    %55 = tpu.reciprocal %54 : vector<2x8x1xf32> -> vector<2x8x1xf32>
    %56 = vector.broadcast %55 : vector<2x8x1xf32> to vector<2x8x8xf32>
    %57 = arith.mulf %52, %56 : vector<2x8x8xf32>
    "tpu.trace_start"() <{level = 10 : i32, message = "bqk,bkd->bqd"}> : () -> ()
    %cst_31 = arith.constant dense<0.000000e+00> : vector<2x8x16xf32>
    %58 = tpu.matmul %57, %44, %cst_31 {dimension_numbers = #tpu.dot_dimension_numbers<[2], [1], [1], [2], [0, 0, 0, 1, 1, 2], [0], [0]>} : vector<2x8x8xf32>, vector<2x8x16xf32>, vector<2x8x16xf32> -> vector<2x8x16xf32>
    "tpu.trace_stop"() : () -> ()
    %59 = vector.shape_cast %58 : vector<2x8x16xf32> to vector<16x16xf32>
    %c0_32 = arith.constant 0 : index
    %c0_33 = arith.constant 0 : index
    %60 = vector.load %arg21[%c0_32, %c0_33] : memref<16x32xf32, #tpu.memory_space<vmem>>, vector<16x16xf32>
    tpu.vector_store %arg21[%c0_32, %c0_33], %59 {strides = array<i32>} : memref<16x32xf32, #tpu.memory_space<vmem>>, vector<16x16xf32>,
    %61 = vector.extract_strided_slice %39 {offsets = [0, 0, 16], sizes = [2, 8, 16], strides = [1, 1, 1]} : vector<2x8x32xf32> to vector<2x8x16xf32>
    %62 = vector.extract_strided_slice %40 {offsets = [0, 0, 16], sizes = [2, 8, 16], strides = [1, 1, 1]} : vector<2x8x32xf32> to vector<2x8x16xf32>
    %63 = vector.extract_strided_slice %41 {offsets = [0, 0, 16], sizes = [2, 8, 16], strides = [1, 1, 1]} : vector<2x8x32xf32> to vector<2x8x16xf32>
    "tpu.trace_start"() <{level = 10 : i32, message = "bqd,bkd->bqk"}> : () -> ()
    %cst_34 = arith.constant dense<0.000000e+00> : vector<2x8x8xf32>
    %64 = tpu.matmul %61, %62, %cst_34 {dimension_numbers = #tpu.dot_dimension_numbers<[2], [2], [1], [1], [0, 0, 0, 1, 1, 1], [0], [0]>} : vector<2x8x16xf32>, vector<2x8x16xf32>, vector<2x8x8xf32> -> vector<2x8x8xf32>
    "tpu.trace_stop"() : () -> ()
    %65 = vector.broadcast %5 : vector<2x1x8xf32> to vector<2x8x8xf32>
    %66 = arith.addf %64, %65 : vector<2x8x8xf32>
    %cst_35 = arith.constant dense<0xFF800000> : vector<2x8xf32>
    %67 = vector.multi_reduction <maximumf>, %66, %cst_35 [2] : vector<2x8x8xf32> to vector<2x8xf32>
    %68 = vector.shape_cast %67 : vector<2x8xf32> to vector<2x8x1xf32>
    %69 = vector.broadcast %68 : vector<2x8x1xf32> to vector<2x8x8xf32>
    %70 = arith.subf %66, %69 : vector<2x8x8xf32>
    %71 = math.exp %70 : vector<2x8x8xf32>
    %cst_36 = arith.constant dense<0.000000e+00> : vector<2x8xf32>
    %72 = vector.multi_reduction <add>, %71, %cst_36 [2] : vector<2x8x8xf32> to vector<2x8xf32>
    %73 = vector.shape_cast %72 : vector<2x8xf32> to vector<2x8x1xf32>
    %74 = tpu.reciprocal %73 : vector<2x8x1xf32> -> vector<2x8x1xf32>
    %75 = vector.broadcast %74 : vector<2x8x1xf32> to vector<2x8x8xf32>
    %76 = arith.mulf %71, %75 : vector<2x8x8xf32>
    "tpu.trace_start"() <{level = 10 : i32, message = "bqk,bkd->bqd"}> : () -> ()
    %cst_37 = arith.constant dense<0.000000e+00> : vector<2x8x16xf32>
    %77 = tpu.matmul %76, %63, %cst_37 {dimension_numbers = #tpu.dot_dimension_numbers<[2], [1], [1], [2], [0, 0, 0, 1, 1, 2], [0], [0]>} : vector<2x8x8xf32>, vector<2x8x16xf32>, vector<2x8x16xf32> -> vector<2x8x16xf32>
    "tpu.trace_stop"() : () -> ()
    %78 = vector.shape_cast %77 : vector<2x8x16xf32> to vector<16x16xf32>
    %c0_38 = arith.constant 0 : index
    %c16 = arith.constant 16 : index
    %79 = vector.load %arg21[%c0_38, %c16] : memref<16x32xf32, #tpu.memory_space<vmem>>, vector<16x16xf32>
    tpu.vector_store %arg21[%c0_38, %c16], %78 {strides = array<i32>} : memref<16x32xf32, #tpu.memory_space<vmem>>, vector<16x16xf32>,
    %c0_39 = arith.constant 0 : index
    %c0_40 = arith.constant 0 : index
    %80 = vector.load %arg21[%c0_39, %c0_40] : memref<16x32xf32, #tpu.memory_space<vmem>>, vector<16x32xf32>
    %c0_41 = arith.constant 0 : index
    %c0_42 = arith.constant 0 : index
    %c0_43 = arith.constant 0 : index
    %81 = vector.load %arg11[%c0_41, %c0_42, %c0_43] : memref<1x32x32xf32, #tpu.memory_space<vmem>>, vector<1x32x32xf32>
    %82 = vector.shape_cast %81 : vector<1x32x32xf32> to vector<32x32xf32>
    %cst_44 = arith.constant dense<0.000000e+00> : vector<16x32xf32>
    %83 = tpu.matmul %80, %82, %cst_44 {dimension_numbers = #tpu.dot_dimension_numbers<[1], [0], [0], [1], [0, 0, 1, 1], [], []>} : vector<16x32xf32>, vector<32x32xf32>, vector<16x32xf32> -> vector<16x32xf32>
    %84 = arith.addf %4, %83 : vector<16x32xf32>
    %c0_45 = arith.constant 0 : index
    %c0_46 = arith.constant 0 : index
    %c0_47 = arith.constant 0 : index
    %85 = vector.load %arg12[%c0_45, %c0_46, %c0_47] : memref<1x1x32xf32, #tpu.memory_space<vmem>>, vector<1x1x32xf32>
    %86 = vector.shape_cast %85 : vector<1x1x32xf32> to vector<1x32xf32>
    %c0_48 = arith.constant 0 : index
    %c0_49 = arith.constant 0 : index
    %c0_50 = arith.constant 0 : index
    %87 = vector.load %arg13[%c0_48, %c0_49, %c0_50] : memref<1x1x32xf32, #tpu.memory_space<vmem>>, vector<1x1x32xf32>
    %88 = vector.shape_cast %87 : vector<1x1x32xf32> to vector<1x32xf32>
    %cst_51 = arith.constant dense<0.000000e+00> : vector<16xf32>
    %89 = vector.multi_reduction <add>, %84, %cst_51 [1] : vector<16x32xf32> to vector<16xf32>
    %90 = vector.shape_cast %89 : vector<16xf32> to vector<16x1xf32>
    %cst_52 = arith.constant 3.200000e+01 : f32
    %91 = vector.broadcast %cst_52 : f32 to vector<16x1xf32>
    %92 = arith.divf %90, %91 : vector<16x1xf32>
    %93 = vector.broadcast %92 : vector<16x1xf32> to vector<16x32xf32>
    %94 = arith.subf %84, %93 : vector<16x32xf32>
    %95 = arith.mulf %94, %94 : vector<16x32xf32>
    %cst_53 = arith.constant dense<0.000000e+00> : vector<16xf32>
    %96 = vector.multi_reduction <add>, %95, %cst_53 [1] : vector<16x32xf32> to vector<16xf32>
    %97 = vector.shape_cast %96 : vector<16xf32> to vector<16x1xf32>
    %cst_54 = arith.constant 3.100000e+01 : f32
    %98 = vector.broadcast %cst_54 : f32 to vector<16x1xf32>
    %99 = arith.divf %97, %98 : vector<16x1xf32>
    %100 = math.sqrt %99 : vector<16x1xf32>
    %cst_55 = arith.constant 9.99999997E-7 : f32
    %101 = vector.broadcast %cst_55 : f32 to vector<16x1xf32>
    %102 = arith.addf %100, %101 : vector<16x1xf32>
    %103 = vector.broadcast %102 : vector<16x1xf32> to vector<16x32xf32>
    %104 = arith.divf %94, %103 : vector<16x32xf32>
    %105 = vector.broadcast %86 : vector<1x32xf32> to vector<16x32xf32>
    %106 = arith.mulf %105, %104 : vector<16x32xf32>
    %107 = vector.broadcast %88 : vector<1x32xf32> to vector<16x32xf32>
    %108 = arith.addf %106, %107 : vector<16x32xf32>
    %c0_56 = arith.constant 0 : index
    %c0_57 = arith.constant 0 : index
    %c0_58 = arith.constant 0 : index
    %109 = vector.load %arg14[%c0_56, %c0_57, %c0_58] : memref<1x32x64xf32, #tpu.memory_space<vmem>>, vector<1x32x64xf32>
    %110 = vector.shape_cast %109 : vector<1x32x64xf32> to vector<32x64xf32>
    %cst_59 = arith.constant dense<0.000000e+00> : vector<16x64xf32>
    %111 = tpu.matmul %108, %110, %cst_59 {dimension_numbers = #tpu.dot_dimension_numbers<[1], [0], [0], [1], [0, 0, 1, 1], [], []>} : vector<16x32xf32>, vector<32x64xf32>, vector<16x64xf32> -> vector<16x64xf32>
    %c0_60 = arith.constant 0 : index
    %c0_61 = arith.constant 0 : index
    %c0_62 = arith.constant 0 : index
    %112 = vector.load %arg15[%c0_60, %c0_61, %c0_62] : memref<1x1x64xf32, #tpu.memory_space<vmem>>, vector<1x1x64xf32>
    %113 = vector.shape_cast %112 : vector<1x1x64xf32> to vector<1x64xf32>
    %114 = vector.broadcast %113 : vector<1x64xf32> to vector<16x64xf32>
    %115 = arith.addf %111, %114 : vector<16x64xf32>
    %cst_63 = arith.constant 0.000000e+00 : f32
    %116 = vector.broadcast %cst_63 : f32 to vector<16x64xf32>
    %117 = arith.maximumf %115, %116 : vector<16x64xf32>
    %c0_64 = arith.constant 0 : index
    %c0_65 = arith.constant 0 : index
    %c0_66 = arith.constant 0 : index
    %118 = vector.load %arg16[%c0_64, %c0_65, %c0_66] : memref<1x64x32xf32, #tpu.memory_space<vmem>>, vector<1x64x32xf32>
    %119 = vector.shape_cast %118 : vector<1x64x32xf32> to vector<64x32xf32>
    %cst_67 = arith.constant dense<0.000000e+00> : vector<16x32xf32>
    %120 = tpu.matmul %117, %119, %cst_67 {dimension_numbers = #tpu.dot_dimension_numbers<[1], [0], [0], [1], [0, 0, 1, 1], [], []>} : vector<16x64xf32>, vector<64x32xf32>, vector<16x32xf32> -> vector<16x32xf32>
    %c0_68 = arith.constant 0 : index
    %c0_69 = arith.constant 0 : index
    %c0_70 = arith.constant 0 : index
    %121 = vector.load %arg17[%c0_68, %c0_69, %c0_70] : memref<1x1x32xf32, #tpu.memory_space<vmem>>, vector<1x1x32xf32>
    %122 = vector.shape_cast %121 : vector<1x1x32xf32> to vector<1x32xf32>
    %123 = vector.broadcast %122 : vector<1x32xf32> to vector<16x32xf32>
    %124 = arith.addf %120, %123 : vector<16x32xf32>
    %125 = arith.addf %84, %124 : vector<16x32xf32>
    %c1_i32 = arith.constant 1 : i32
    %126 = arith.cmpi slt, %arg1, %c1_i32 : i32
    %127 = arith.extui %126 : i1 to i32
    %c0_i32_71 = arith.constant 0 : i32
    %128 = arith.cmpi ne, %127, %c0_i32_71 : i32
    scf.if %128 {
      %132 = vector.shape_cast %125 : vector<16x32xf32> to vector<2x8x32xf32>
      %c0_74 = arith.constant 0 : index
      %c0_75 = arith.constant 0 : index
      %c0_76 = arith.constant 0 : index
      %133 = vector.load %arg20[%c0_74, %c0_75, %c0_76] : memref<2x8x32xf32, #tpu.memory_space<vmem>>, vector<2x8x32xf32>
      tpu.vector_store %arg20[%c0_74, %c0_75, %c0_76], %132 {strides = array<i32>} : memref<2x8x32xf32, #tpu.memory_space<vmem>>, vector<2x8x32xf32>,
    } else {
    }
    %c1_i32_72 = arith.constant 1 : i32
    %129 = arith.cmpi eq, %arg1, %c1_i32_72 : i32
    %130 = arith.extui %129 : i1 to i32
    %c0_i32_73 = arith.constant 0 : i32
    %131 = arith.cmpi ne, %130, %c0_i32_73 : i32
    scf.if %131 {
      %c0_74 = arith.constant 0 : index
      %c0_75 = arith.constant 0 : index
      %132 = vector.load %arg18[%c0_74, %c0_75] : memref<1x32xf32, #tpu.memory_space<vmem>>, vector<1x32xf32>
      %c0_76 = arith.constant 0 : index
      %c0_77 = arith.constant 0 : index
      %133 = vector.load %arg19[%c0_76, %c0_77] : memref<1x32xf32, #tpu.memory_space<vmem>>, vector<1x32xf32>
      %cst_78 = arith.constant dense<0.000000e+00> : vector<16xf32>
      %134 = vector.multi_reduction <add>, %125, %cst_78 [1] : vector<16x32xf32> to vector<16xf32>
      %135 = vector.shape_cast %134 : vector<16xf32> to vector<16x1xf32>
      %cst_79 = arith.constant 3.200000e+01 : f32
      %136 = vector.broadcast %cst_79 : f32 to vector<16x1xf32>
      %137 = arith.divf %135, %136 : vector<16x1xf32>
      %138 = vector.broadcast %137 : vector<16x1xf32> to vector<16x32xf32>
      %139 = arith.subf %125, %138 : vector<16x32xf32>
      %140 = arith.mulf %139, %139 : vector<16x32xf32>
      %cst_80 = arith.constant dense<0.000000e+00> : vector<16xf32>
      %141 = vector.multi_reduction <add>, %140, %cst_80 [1] : vector<16x32xf32> to vector<16xf32>
      %142 = vector.shape_cast %141 : vector<16xf32> to vector<16x1xf32>
      %cst_81 = arith.constant 3.100000e+01 : f32
      %143 = vector.broadcast %cst_81 : f32 to vector<16x1xf32>
      %144 = arith.divf %142, %143 : vector<16x1xf32>
      %145 = math.sqrt %144 : vector<16x1xf32>
      %cst_82 = arith.constant 9.99999997E-7 : f32
      %146 = vector.broadcast %cst_82 : f32 to vector<16x1xf32>
      %147 = arith.addf %145, %146 : vector<16x1xf32>
      %148 = vector.broadcast %147 : vector<16x1xf32> to vector<16x32xf32>
      %149 = arith.divf %139, %148 : vector<16x32xf32>
      %150 = vector.broadcast %132 : vector<1x32xf32> to vector<16x32xf32>
      %151 = arith.mulf %150, %149 : vector<16x32xf32>
      %152 = vector.broadcast %133 : vector<1x32xf32> to vector<16x32xf32>
      %153 = arith.addf %151, %152 : vector<16x32xf32>
      %154 = vector.shape_cast %153 : vector<16x32xf32> to vector<2x8x32xf32>
      %c0_83 = arith.constant 0 : index
      %c0_84 = arith.constant 0 : index
      %c0_85 = arith.constant 0 : index
      %155 = vector.load %arg20[%c0_83, %c0_84, %c0_85] : memref<2x8x32xf32, #tpu.memory_space<vmem>>, vector<2x8x32xf32>
      tpu.vector_store %arg20[%c0_83, %c0_84, %c0_85], %154 {strides = array<i32>} : memref<2x8x32xf32, #tpu.memory_space<vmem>>, vector<2x8x32xf32>,
    } else {
    }
    return
  }
  func.func @transform_0(%arg0: i32, %arg1: i32) -> (i32, i32, i32) {
    %c0_i32 = arith.constant 0 : i32
    %c0_i32_0 = arith.constant 0 : i32
    %c0_i32_1 = arith.constant 0 : i32
    return %arg0, %c0_i32, %c0_i32_0 : i32, i32, i32
  }
  func.func @transform_1(%arg0: i32, %arg1: i32) -> (i32, i32) {
    %c0_i32 = arith.constant 0 : i32
    %c0_i32_0 = arith.constant 0 : i32
    %c0_i32_1 = arith.constant 0 : i32
    return %c0_i32, %c0_i32_0 : i32, i32
  }
  func.func @transform_2(%arg0: i32, %arg1: i32) -> (i32, i32, i32) {
    %c0_i32 = arith.constant 0 : i32
    %c0_i32_0 = arith.constant 0 : i32
    %c0_i32_1 = arith.constant 0 : i32
    %c0_i32_2 = arith.constant 0 : i32
    return %c0_i32, %c0_i32_0, %c0_i32_1 : i32, i32, i32
  }
  func.func @transform_3(%arg0: i32, %arg1: i32) -> (i32, i32, i32) {
    %c0_i32 = arith.constant 0 : i32
    %c0_i32_0 = arith.constant 0 : i32
    %c0_i32_1 = arith.constant 0 : i32
    return %arg0, %c0_i32, %c0_i32_0 : i32, i32, i32
  }
  func.func @transform_4(%arg0: i32, %arg1: i32) -> (i32, i32, i32) {
    %c0_i32 = arith.constant 0 : i32
    %c0_i32_0 = arith.constant 0 : i32
    %c0_i32_1 = arith.constant 0 : i32
    return %arg1, %c0_i32, %c0_i32_0 : i32, i32, i32
  }
  func.func @transform_5(%arg0: i32, %arg1: i32) -> (i32, i32, i32) {
    %c0_i32 = arith.constant 0 : i32
    %c0_i32_0 = arith.constant 0 : i32
    %c0_i32_1 = arith.constant 0 : i32
    return %arg1, %c0_i32, %c0_i32_0 : i32, i32, i32
  }
  func.func @transform_6(%arg0: i32, %arg1: i32) -> (i32, i32, i32) {
    %c0_i32 = arith.constant 0 : i32
    %c0_i32_0 = arith.constant 0 : i32
    %c0_i32_1 = arith.constant 0 : i32
    return %arg1, %c0_i32, %c0_i32_0 : i32, i32, i32
  }
  func.func @transform_7(%arg0: i32, %arg1: i32) -> (i32, i32, i32) {
    %c0_i32 = arith.constant 0 : i32
    %c0_i32_0 = arith.constant 0 : i32
    %c0_i32_1 = arith.constant 0 : i32
    return %arg1, %c0_i32, %c0_i32_0 : i32, i32, i32
  }
  func.func @transform_8(%arg0: i32, %arg1: i32) -> (i32, i32, i32) {
    %c0_i32 = arith.constant 0 : i32
    %c0_i32_0 = arith.constant 0 : i32
    %c0_i32_1 = arith.constant 0 : i32
    return %arg1, %c0_i32, %c0_i32_0 : i32, i32, i32
  }
  func.func @transform_9(%arg0: i32, %arg1: i32) -> (i32, i32, i32) {
    %c0_i32 = arith.constant 0 : i32
    %c0_i32_0 = arith.constant 0 : i32
    %c0_i32_1 = arith.constant 0 : i32
    return %arg1, %c0_i32, %c0_i32_0 : i32, i32, i32
  }
  func.func @transform_10(%arg0: i32, %arg1: i32) -> (i32, i32, i32) {
    %c0_i32 = arith.constant 0 : i32
    %c0_i32_0 = arith.constant 0 : i32
    %c0_i32_1 = arith.constant 0 : i32
    return %arg1, %c0_i32, %c0_i32_0 : i32, i32, i32
  }
  func.func @transform_11(%arg0: i32, %arg1: i32) -> (i32, i32, i32) {
    %c0_i32 = arith.constant 0 : i32
    %c0_i32_0 = arith.constant 0 : i32
    %c0_i32_1 = arith.constant 0 : i32
    return %arg1, %c0_i32, %c0_i32_0 : i32, i32, i32
  }
  func.func @transform_12(%arg0: i32, %arg1: i32) -> (i32, i32, i32) {
    %c0_i32 = arith.constant 0 : i32
    %c0_i32_0 = arith.constant 0 : i32
    %c0_i32_1 = arith.constant 0 : i32
    return %arg1, %c0_i32, %c0_i32_0 : i32, i32, i32
  }
  func.func @transform_13(%arg0: i32, %arg1: i32) -> (i32, i32, i32) {
    %c0_i32 = arith.constant 0 : i32
    %c0_i32_0 = arith.constant 0 : i32
    %c0_i32_1 = arith.constant 0 : i32
    return %arg1, %c0_i32, %c0_i32_0 : i32, i32, i32
  }
  func.func @transform_14(%arg0: i32, %arg1: i32) -> (i32, i32, i32) {
    %c0_i32 = arith.constant 0 : i32
    %c0_i32_0 = arith.constant 0 : i32
    %c0_i32_1 = arith.constant 0 : i32
    return %arg1, %c0_i32, %c0_i32_0 : i32, i32, i32
  }
  func.func @transform_15(%arg0: i32, %arg1: i32) -> (i32, i32, i32) {
    %c0_i32 = arith.constant 0 : i32
    %c0_i32_0 = arith.constant 0 : i32
    %c0_i32_1 = arith.constant 0 : i32
    return %arg1, %c0_i32, %c0_i32_0 : i32, i32, i32
  }
  func.func @transform_16(%arg0: i32, %arg1: i32) -> (i32, i32) {
    %c0_i32 = arith.constant 0 : i32
    %c0_i32_0 = arith.constant 0 : i32
    %c0_i32_1 = arith.constant 0 : i32
    return %c0_i32, %c0_i32_0 : i32, i32
  }
  func.func @transform_17(%arg0: i32, %arg1: i32) -> (i32, i32) {
    %c0_i32 = arith.constant 0 : i32
    %c0_i32_0 = arith.constant 0 : i32
    %c0_i32_1 = arith.constant 0 : i32
    return %c0_i32, %c0_i32_0 : i32, i32
  }
  func.func @transform_18(%arg0: i32, %arg1: i32) -> (i32, i32, i32) {
    %c0_i32 = arith.constant 0 : i32
    %c0_i32_0 = arith.constant 0 : i32
    %c0_i32_1 = arith.constant 0 : i32
    return %arg0, %c0_i32, %c0_i32_0 : i32, i32, i32
  }
}

</mosaic_0001>

<bundles_post_ra>
// kernel: tpu_custom_call.1
= control target key start
LH: loop header
LB: loop body
LE: loop exit
PB: predicated region body
PF: predicated region fallthrough
CT: control target
= control target key end

     0   :  { %s3125_s0 = inlined_call_operand.hbm [shape: f32[2,8,32], index: 0, kind: input, shape index: {}]   ;;  %s3126_s1 = inlined_call_operand.hbm [shape: f32[32,32], index: 1, kind: input, shape index: {}]   ;;  %s3127_s2 = inlined_call_operand.hbm [shape: f32[1,8,32], index: 2, kind: input, shape index: {}]   ;;  %s3128_s3 = inlined_call_operand.vmem [shape: f32[2,1,8], index: 3, kind: input, shape index: {}]   ;;  %s3129_s4 = inlined_call_operand.hbm [shape: f32[2,1,32], index: 4, kind: input, shape index: {}]   ;;  %s3130_s5 = inlined_call_operand.hbm [shape: f32[2,1,32], index: 5, kind: input, shape index: {}]   ;;  %s3131_s6 = inlined_call_operand.vmem [shape: f32[2,32,32], index: 6, kind: input, shape index: {}]   ;;  %s3132_s7 = inlined_call_operand.vmem [shape: f32[2,32,32], index: 7, kind: input, shape index: {}]   ;;  %s3133_s8 = inlined_call_operand.vmem [shape: f32[2,32,32], index: 8, kind: input, shape index: {}]   ;;  %s3134_s9 = inlined_call_operand.hbm [shape: f32[2,32,32], index: 9, kind: input, shape index: {}]   ;;  %s3135_s10 = inlined_call_operand.vmem [shape: f32[2,1,32], index: 10, kind: input, shape index: {}]   ;;  %s3136_s11 = inlined_call_operand.vmem [shape: f32[2,1,32], index: 11, kind: input, shape index: {}]   ;;  %s3137_s12 = inlined_call_operand.hbm [shape: f32[2,32,64], index: 12, kind: input, shape index: {}]   ;;  %s3138_s13 = inlined_call_operand.vmem [shape: f32[2,1,64], index: 13, kind: input, shape index: {}]   ;;  %s3139_s14 = inlined_call_operand.vmem [shape: f32[2,64,32], index: 14, kind: input, shape index: {}]   ;;  %s3140_s15 = inlined_call_operand.vmem [shape: f32[2,1,32], index: 15, kind: input, shape index: {}]   ;;  %s3141_s16 = inlined_call_operand.vmem [shape: f32[1,32], index: 16, kind: input, shape index: {}]   ;;  %s3142_s17 = inlined_call_operand.vmem [shape: f32[1,32], index: 17, kind: input, shape index: {}]   ;;  %s3143_s18 = inlined_call_operand.hbm [shape: f32[2,8,32], index: 18, kind: output, shape index: {}]  }
   0x1   :  { %3153 = sst [smem:[#allocation26_spill]] %s3125_s0 }
   0x2   :  { %3154 = sst [smem:[#allocation27_spill]] %s3126_s1 }
   0x3   :  { %3155 = sst [smem:[#allocation28_spill]] %s3127_s2 }
   0x4   :  { %3156 = sst [smem:[#allocation29_spill]] %s3128_s3 }
   0x5   :  { %3157 = sst [smem:[#allocation30_spill]] %s3129_s4 }
   0x6   :  { %3158 = sst [smem:[#allocation31_spill]] %s3130_s5 }
   0x7   :  { %3159 = sst [smem:[#allocation32_spill]] %s3131_s6 }
   0x8   :  { %3160 = sst [smem:[#allocation33_spill]] %s3132_s7 }
   0x9   :  { %3161 = sst [smem:[#allocation34_spill]] %s3133_s8 }
   0xa   :  { %3162 = sst [smem:[#allocation35_spill]] %s3134_s9 }
   0xb   :  { %3163 = sst [smem:[#allocation36_spill]] %s3136_s11 }
   0xc   :  { %3164 = sst [smem:[#allocation37_spill]] %s3137_s12 }
   0xd   :  { %3165 = sst [smem:[#allocation38_spill]] %s3138_s13 }
   0xe   :  { %3166 = sst [smem:[#allocation39_spill]] %s3139_s14 }
   0xf   :  { %3167 = sst [smem:[#allocation40_spill]] %s3140_s15 }
  0x10   :  { %3168 = sst [smem:[#allocation41_spill]] %s3141_s16 }
  0x11   :  { %3169 = sst [smem:[#allocation42_spill]] %s3142_s17 }
  0x12   :  { %3170 = sst [smem:[#allocation43_spill]] %s3143_s18 }
  0x13   :  { %23 = vsyncpa [#allocation4], 0 }
  0x14   :  { %24 = vsyncpa [#allocation7], 0 }
  0x15   :  { %25 = vsyncpa [#allocation10], 0 }
  0x16   :  { %27 = vsyncpa [#allocation10 + $0x1], 0 }
  0x17   :  { %28 = vsyncpa [#allocation13], 0 }
  0x18   :  { %30 = vsyncpa [#allocation13 + $0x1], 0 }
  0x19   :  { %31 = vsyncpa [#allocation5], 0  ;;  %s2704_s27 = smov 0   ;;  %s2706_s28 = smov 0  }
  0x1a   :  { %s2708_s29 = smov 0   ;;  %s2710_s30 = smov 0  }
  0x1b   :  { %s2712_s0 = smov 0   ;;  %s2714_s19 = smov 0  }
  0x1c LB: > { %3171 = sst [smem:[#allocation21_spill]] %s2583_s29  ;;  %s2735_s1 = sadd.s32 4294967295, %s2595_s19   ;;  %s2595_s19 = sphi %s2714_s19, %s37_s19   ;;  %s2591_s0 = sphi %s2712_s0, %s3211_s0   ;;  %s2587_s30 = sphi %s2710_s30, %s3210_s30   ;;  %s2583_s29 = sphi %s2708_s29, %s3209_s29   ;;  %s2579_s28 = sphi %s2706_s28, %s3213_s28   ;;  %s2575_s27 = sphi %s2704_s27, %s3212_s27  }
  0x1d   : > { %3172 = sst [smem:[#allocation22_spill]] %s2591_s0  ;;  %p2052_p0 = scmp.ge.s32.totalorder %s2595_s19, 1 }
  0x1e   : > { %3173 = sst [smem:[#allocation23_spill]] %s2595_s19  ;;  %p164_p1 = scmp.eq.s32.totalorder %s2735_s1, 0 }
  0x1f   : > { %p528_p2 = scmp.lt.s32.totalorder %s2595_s19, 3  ;;  %s3174_s22 = sld [smem:[#allocation27_spill]] }
  0x20   : > { %s2597_s24 = smov [#allocation6]   ;;  %s3144_s20 = smov 128  }
  0x21   : > { %p2743_p3 = pnand %p2052_p0, %p528_p2  ;;  %s558_s25 = sshll.u32 %s2597_s24, 4  ;;  %s559_s25 = int_to_ptr.vmem [resolvable:$true] %s558_s25 }
  0x22   : > { %s3146_s21 = smov 8   ;;  %s150_s24 = sadd.s32 1, %s2583_s29 }
  0x23   : > { %p2145_p4 = pneg %p2743_p3  ;;  %p157_p7 = scmp.ne.s32.totalorder %s2583_s29, %s2579_s28 }
  0x24   : > { %p158_p8 = scmp.eq.s32.totalorder %s2595_s19, 0  ;;  %p163_p10 = scmp.ne.s32.totalorder %s2579_s28, %s2575_s27 }
  0x25   : > { %s556_s2 = sshll.u32 %s3174_s22, 4  ;;  %p2751_p5 = pnand %p2145_p4, %p164_p1  ;;  %s557_s2 = int_to_ptr.hbm [resolvable:$true] %s556_s2 }
  0x26   : > { %s46_s22 = sadd.s32 1, %s2591_s0  ;;  %p2767_p9 = por %p158_p8, %p157_p7 }
  0x27   : > { %2151 = dma.hbm_to_vmem [thread:$0]  (!%p2751_p5), %s557_s2, 512, %s559_s25, [#allocation7], %s3144_s20, %s3144_s20, %s3146_s21  }
  0x28   : > { %p47_p6 = scmp.ge.s32.totalorder %s46_s22, 2  ;;  %p2171_p11 = scmp.lt.s32.totalorder %s2595_s19, 2 }
  0x29   : > { %p2778_p13 = por %p164_p1, %p163_p10  ;;  %s598_s25 = sand.u32 1, %s2595_s19  }
  0x2a   : > { %s3215_s22 = smov (%p47_p6, %s46_s22), 0  ;;  %s2784_s20 = sand.u32 1, %s2583_s29  }
  0x2b   : > { %3177 = sst [smem:[#allocation24_spill]] %s3215_s22  ;;  %s147_s17 = ssub.s32 %s2591_s0, %s3215_s22 }
  0x2c   : > { %p148_p12 = scmp.eq.s32.totalorder %s147_s17, 0  ;;  %s3181_s4 = sld [smem:[#allocation30_spill]] }
  0x2d   : > { %s601_s22 = scalar_lea.vmem [#allocation9], %s2784_s20  ;;  %p2796_p0 = pnand %p2171_p11, %p2767_p9 }
  0x2e   : > { %s2787_s21 = scalar_select %p148_p12, %s2583_s29, %s150_s24  }
  0x2f   : > { %s608_s15 = sshll.u32 %s601_s22, 4  ;;  %s2058_s19 = sshll.u32 %s2784_s20, 5  ;;  %s609_s15 = int_to_ptr.vmem [resolvable:$true] %s608_s15 }
  0x30   : > { %3180 = sst [smem:[#allocation25_spill]] %s2787_s21  ;;  %s2801_s13 = scalar_lea.sflag [#allocation10], %s598_s25 }
  0x31   : > { %s694_s3 = scalar_lea.vmem [#allocation14], %s2058_s19  ;;  %s2111_s22 = sshll.u32 %s2591_s0, 5 }
  0x32   : > { %s604_s27 = scalar_lea.hbm %s3181_s4, %s2591_s0  ;;  %s702_s16 = sshll.u32 %s694_s3, 4  ;;  %s2806_s16 = int_to_ptr.vmem [resolvable:$true] %s702_s16 }
  0x33   : > { %s606_s17 = sshll.u32 %s604_s27, 4  ;;  %s3183_s9 = sld [smem:[#allocation35_spill]]  ;;  %s607_s17 = int_to_ptr.hbm [resolvable:$true] %s606_s17 }
  0x34   : > { %2158 = dma.hbm_to_vmem [thread:$0]  (!%p2796_p0), %s607_s17, 16, %s609_s15, %s2801_s13  }
  0x35   : > { %s660_s4 = scalar_lea.vmem [#allocation12], %s2058_s19  ;;  %s3184_s12 = sld [smem:[#allocation37_spill]] }
  0x36   : > { %s668_s21 = sshll.u32 %s660_s4, 4  ;;  %s657_s15 = scalar_lea.sflag [#allocation13], %s598_s25  ;;  %s669_s21 = int_to_ptr.vmem [resolvable:$true] %s668_s21 }
  0x37   : > { %s3185_s17 = smov 8   ;;  %s3186_s3 = smov 128  }
  0x38   : > { %s3187_s27 = sld [smem:[#allocation26_spill]] }
  0x39   : > { %s665_s18 = scalar_lea.hbm %s3183_s9, %s2111_s22  ;;  %s2600_s9 = smov [#allocation3]  }
  0x3a   : > { %s666_s29 = sshll.u32 %s665_s18, 4  ;;  %s544_s8 = sshll.u32 %s2600_s9, 4  ;;  %s667_s29 = int_to_ptr.hbm [resolvable:$true] %s666_s29  ;;  %s545_s8 = int_to_ptr.vmem [resolvable:$true] %s544_s8 }
  0x3b   : > { %s699_s7 = scalar_lea.hbm %s3184_s12, %s2111_s22  ;;  %s3188_s22 = sld [smem:[#allocation28_spill]] }
  0x3c   : > { %2164 = dma.hbm_to_vmem [thread:$0]  (!%p2796_p0), %s667_s29, 512, %s669_s21, %s657_s15, %s3186_s3, %s3186_s3, %s3185_s17  }
  0x3d   : > { %s700_s24 = sshll.u32 %s699_s7, 4  ;;  %s2601_s7 = smov [#allocation8]   ;;  %s701_s24 = int_to_ptr.hbm [resolvable:$true] %s700_s24 }
  0x3e   : > { %s542_s18 = sshll.u32 %s3187_s27, 4  ;;  %s573_s29 = sshll.u32 %s2601_s7, 4  ;;  %s543_s18 = int_to_ptr.hbm [resolvable:$true] %s542_s18  ;;  %s574_s29 = int_to_ptr.vmem [resolvable:$true] %s573_s29 }
  0x3f   : > { %2148 = dma.hbm_to_vmem [thread:$0]  (!%p2751_p5), %s543_s18, 256, %s545_s8, [#allocation4], %s3186_s3, %s3186_s3, %s3185_s17  }
  0x40   : > { %s3189_s5 = sld [smem:[#allocation31_spill]]  ;;  %s618_s27 = scalar_lea.vmem [#allocation11], %s2784_s20 }
  0x41   : > { %s571_s12 = sshll.u32 %s3188_s22, 4  ;;  %s625_s6 = sshll.u32 %s618_s27, 4  ;;  %s572_s12 = int_to_ptr.hbm [resolvable:$true] %s571_s12  ;;  %s626_s6 = int_to_ptr.vmem [resolvable:$true] %s625_s6 }
  0x42   : > { %2154 = dma.hbm_to_vmem [thread:$0]  (!%p2751_p5), %s572_s12, 128, %s574_s29, [#allocation7]  }
  0x43   : > { %2167 = dma.hbm_to_vmem [thread:$0]  (!%p2796_p0), %s701_s24, 512, %s2806_s16, %s657_s15, %s3186_s3, %s3186_s3, %s3185_s17  }
  0x44   : > { %734 = sbr.rel (%p2743_p3) target bundleno = 2431 (0x97f), region = 92 }
  0x46   : > { %s621_s9 = scalar_lea.hbm %s3189_s5, %s2591_s0 }
  0x47   : > { %s623_s4 = sshll.u32 %s621_s9, 4  ;;  %s624_s4 = int_to_ptr.hbm [resolvable:$true] %s623_s4 }
  0x48   : > { %2161 = dma.hbm_to_vmem [thread:$0]  (!%p2796_p0), %s624_s4, 16, %s626_s6, %s2801_s13  }
  0x49   : > { %2554 = dma.done.wait (%p164_p1), [#allocation4], 256  }
  0x4a   : > { %2556 = vsyncadd (%p164_p1), [#allocation4], 4294967040 }
  0x4b   : > { %2558 = dma.done.wait (%p164_p1), [#allocation7], 640  }
  0x4c   : > { %2560 = vsyncadd (%p164_p1), [#allocation7], 4294966656  ;;  %s751_s6 = sand.u32 1, %s2735_s1   ;;  %s2859_s12 = sand.u32 1, %s2579_s28  }
  0x4d   : > { %s752_s13 = scalar_lea.sflag [#allocation10], %s751_s6 }
  0x4e   : > { %2562 = dma.done.wait (%p2778_p13), %s752_s13, 32  }
  0x4f   : > { %2564 = vsyncadd (%p2778_p13), %s752_s13, 4294967264  ;;  %s2068_s23 = sshll.u32 %s2859_s12, 5  ;;  %s770_s20 = scalar_lea.sflag [#allocation13], %s751_s6 }
  0x50   : > { %s2868_s16 = scalar_lea.vmem [#allocation12], %s2068_s23 }
  0x51   : > { %2566 = dma.done.wait (%p2778_p13), %s770_s20, 1024  }
  0x52   : > { %2568 = vsyncadd (%p2778_p13), %s770_s20, 4294966272  ;;  %p887_p1 = scmp.lt.s32.totalorder %s2587_s30, 1  ;;  %s3190_s2 = sld [smem:[#allocation32_spill]] }
  0x53   : > { %s3191_s29 = sld [smem:[#allocation33_spill]]  ;;  %p2078_p2 = scmp.ne.s32.totalorder %s2587_s30, 0 }
  0x54   : > { %s2876_s15 = scalar_select %p887_p1, %s2587_s30, 1 }
  0x55   : > { %s3192_s4 = sld [smem:[#allocation34_spill]] }
  0x56   : > { %s2113_s17 = sshll.u32 %s2876_s15, 5  ;;  %s3193_s20 = sld [smem:[#allocation36_spill]] }
  0x57   : > { %s3194_s26 = sld [smem:[#allocation38_spill]]  ;;  %s2116_s11 = sshll.u32 %s2876_s15, 6 }
  0x58   : > { %s2886_s25 = scalar_lea.vmem %s3190_s2, %s2113_s17  ;;  %s3195_s5 = sld [smem:[#allocation39_spill]] }
  0x59   : > { %s2891_s21 = scalar_lea.vmem %s3191_s29, %s2113_s17  ;;  %s3196_s0 = sld [smem:[#allocation40_spill]] }
  0x5b   : > { %s2896_s27 = scalar_lea.vmem %s3192_s4, %s2113_s17  ;;  %s2916_s17 = scalar_lea.vmem [#allocation14], %s2068_s23 }
  0x5c   : > { %s907_s3 = scalar_lea.vmem %s3193_s20, %s2876_s15  ;;  %923 = sbr.rel (%p2078_p2) target bundleno = 235 (0xeb), region = 124 }
  0x5d   : > { %s910_s8 = scalar_lea.vmem %s3194_s26, %s2876_s15 }
  0x5e   : > { %s2910_s22 = scalar_lea.vmem %s3195_s5, %s2116_s11 }
  0x5f   : > { %s918_s19 = scalar_lea.vmem %s3196_s0, %s2876_s15 }
  0x61   : > { %v929_v0 = vld [vmem:[#allocation6 + $0x18] sm:$0xff]  ;;  %v928_v1 = vld [vmem:[#allocation6 + $0x10] sm:$0xff]  ;;  %v927_v2 = vld [vmem:[#allocation6 + $0x8] sm:$0xff]  ;;  %vm930_vm0 = vcmask 261120  }
  0x62   : > { %949 = vmatpush.msra.mxu0 %v929_v0  ;;  %2117 = vmatpush.msra.mxu1 %v929_v0  ;;  %v926_v3 = vld [vmem:[#allocation6] sm:$0xff]  ;;  %v924_v4 = vld [vmem:[#allocation3] sm:$0xff]  ;;  %v925_v5 = vld [vmem:[#allocation3 + $0x8] sm:$0xff] }
  0x63   : > { %v960_v6 = vld [vmem:[#allocation8] sm:$0xff] }
  0x64   : > { %950 = vmatpush.msra.mxu0 %v928_v1  ;;  %2118 = vmatpush.msra.mxu1 %v928_v1 }
  0x66   : > { %951 = vmatpush.msra.mxu0 %v927_v2  ;;  %2119 = vmatpush.msra.mxu1 %v927_v2 }
  0x68   : > { %952 = vmatpush.msra.mxu0 %v926_v3  ;;  %2120 = vmatpush.msra.mxu1 %v926_v3 }
  0x69   : > { %2079 = vmatmul.msk.f32.vlgmr.msra.gmra.mxu0 %vm930_vm0, %v924_v4  ;;  %2080 = vmatmul.msk.f32.vlgmr.msra.gmra.mxu1 %vm930_vm0, %v925_v5 }
  0xe6   : > { %v954_v7 = vpop.f32.mrf.mxu0  ;;  %v957_v8 = vpop.f32.mrf.mxu1 }
  0xe7   : > { %v961_v9 = vadd.f32 %v960_v6, %v954_v7  ;;  %v962_v10 = vadd.f32 %v960_v6, %v957_v8 }
  0xe9   : > { %963 = vst.msk [vmem:[#allocation15] sm:$0xff] %vm930_vm0, %v961_v9 }
  0xea   : > { %964 = vst.msk [vmem:[#allocation15 + $0x8] sm:$0xff] %vm930_vm0, %v962_v10 }
  0xeb PF: > { %vm971_vm1 = vcmask 261120   ;;  %v2602_v15 = vmov 32.0   ;;  %v2603_v32 = vmov 31.0   ;;  %v1075_v39 = vld [vmem:[%s2886_s25 + $0x18] sm:$0xff]  ;;  %v1074_v42 = vld [vmem:[%s2886_s25 + $0x10] sm:$0xff]  ;;  %v1073_v46 = vld [vmem:[%s2886_s25 + $0x8] sm:$0xff]  ;;  %s3200_s4 = scalar_lea.vmem %s3135_s10, %s2876_s15 }
  0xec   : > { %2245 = vrcp.f32 %v2602_v15  ;;  %v1108_v40 = vld [vmem:[%s2891_s21 + $0x18] sm:$0xff]  ;;  %1094 = vmatpush.msra.mxu0 %v1075_v39  ;;  %v1107_v43 = vld [vmem:[%s2891_s21 + $0x10] sm:$0xff]  ;;  %v1106_v47 = vld [vmem:[%s2891_s21 + $0x8] sm:$0xff]  ;;  %s3197_s5 = scalar_lea.vmem [#allocation9], %s2859_s12  ;;  %s3198_s0 = scalar_lea.vmem [#allocation11], %s2859_s12  ;;  %vm1165_vm0 = vcmask 130048  }
  0xed   : > { %2247 = vrcp.f32 %v2603_v32  ;;  %v1135_v41 = vld [vmem:[%s2896_s27 + $0x18] sm:$0xff]  ;;  %1121 = vmatpush.msra.mxu1 %v1108_v40  ;;  %v1134_v44 = vld [vmem:[%s2896_s27 + $0x10] sm:$0xff]  ;;  %v1133_v49 = vld [vmem:[%s2896_s27 + $0x8] sm:$0xff]  ;;  %s2604_s12 = smov 112   ;;  %s3199_s26 = sld [smem:[#allocation29_spill]] }
  0xee   : > { %1148 = vmatpush.msra.mxu2 %v1135_v41  ;;  %1095 = vmatpush.msra.mxu0 %v1074_v42  ;;  %v1072_v50 = vld [vmem:[%s2886_s25] sm:$0xff]  ;;  %p2105_p3 = scmp.ge.s32.totalorder %s2587_s30, 1 }
  0xef   : > { %1122 = vmatpush.msra.mxu1 %v1107_v43  ;;  %v1105_v51 = vld [vmem:[%s2891_s21] sm:$0xff]  ;;  %s2605_s21 = smov 16  }
  0xf0   : > { %v2919_v11 = vld [vmem:[#allocation15] sm:$0xff]  ;;  %1149 = vmatpush.msra.mxu2 %v1134_v44  ;;  %1096 = vmatpush.msra.mxu0 %v1073_v46  ;;  %v1132_v52 = vld [vmem:[%s2896_s27] sm:$0xff] }
  0xf1   : > { %v972_v12 = vsel %vm971_vm1, %v2919_v11, 0.0  ;;  %v2923_v13 = vld [vmem:[#allocation15 + $0x8] sm:$0xff]  ;;  %1123 = vmatpush.msra.mxu1 %v1106_v47  ;;  %v2238_v32 = vld [vmem:[%s3198_s0] ss:$0 sm:$0xff] }
  0xf2   : > { %973 = vadd.xlane.f32.xlu0 %v972_v12  ;;  %v975_v14 = vsel %vm971_vm1, %v2923_v13, 0.0  ;;  %v2246_v16 = vpop.eup %2245  ;;  %1150 = vmatpush.msra.mxu2 %v1133_v49 }
  0xf3   : > { %v979_v17 = vmul.f32 32.0, %v2246_v16  ;;  %vm983_vm2 = vweird.f32 %v2246_v16  ;;  %v2248_v33 = vpop.eup %2247  ;;  %1097 = vmatpush.msra.mxu0 %v1072_v50  ;;  %1124 = vmatpush.msra.mxu1 %v1105_v51 }
  0xf4   : > { %v998_v34 = vmul.f32 31.0, %v2248_v33  ;;  %vm1002_vm3 = vweird.f32 %v2248_v33  ;;  %1151 = vmatpush.msra.mxu2 %v1132_v52 }
  0xf5   : > { %v980_v18 = vsub.f32 1.0, %v979_v17 }
  0xf6   : > { %v999_v35 = vsub.f32 1.0, %v998_v34 }
  0xf7   : > { %v981_v19 = vmul.f32 %v2246_v16, %v980_v18 }
  0xf8   : > { %v1000_v36 = vmul.f32 %v2248_v33, %v999_v35 }
  0xf9   : > { %v982_v20 = vadd.f32 %v2246_v16, %v981_v19 }
  0xfa   : > { %976 = vadd.xlane.f32.xlu0 %v975_v14  ;;  %v1001_v37 = vadd.f32 %v2248_v33, %v1000_v36 }
  0xfb   : > { %v2927_v21 = vsel %vm983_vm2, %v2246_v16, %v982_v20  ;;  %vm1218_vm2 = vcmask 64512  }
  0xfc   : > { %v2943_v38 = vsel %vm1002_vm3, %v2248_v33, %v1001_v37 }
 0x165   : > { %v974_v22 = vpop.xlane.xlu0 %973 }
 0x166   : > { %v985_v23 = vmul.f32 %v2927_v21, %v974_v22 }
 0x168   : > { %v2931_v24 = vsub.f32 %v2919_v11, %v985_v23 }
 0x16a   : > { %v989_v25 = vmul.f32 %v2931_v24, %v2931_v24 }
 0x16c   : > { %v991_v26 = vsel %vm971_vm1, %v989_v25, 0.0 }
 0x16d   : > { %992 = vadd.xlane.f32.xlu1 %v991_v26  ;;  %v977_v27 = vpop.xlane.xlu0 %976 }
 0x16e   : > { %v986_v28 = vmul.f32 %v2927_v21, %v977_v27  ;;  %v2237_v27 = vld [vmem:[%s3197_s5] ss:$0 sm:$0xff] }
 0x170   : > { %v2938_v29 = vsub.f32 %v2923_v13, %v986_v28 }
 0x172   : > { %v990_v30 = vmul.f32 %v2938_v29, %v2938_v29 }
 0x174   : > { %v994_v31 = vsel %vm971_vm1, %v990_v30, 0.0 }
 0x175   : > { %995 = vadd.xlane.f32.xlu1 %v994_v31 }
 0x1e0   : > { %v993_v45 = vpop.xlane.xlu1 %992 }
 0x1e1   : > { %v1004_v48 = vmul.f32 %v2943_v38, %v993_v45 }
 0x1e3   : > { %2249 = vrsqrt.f32 %v1004_v48  ;;  %vm1013_vm4 = vcmp.eq.f32.partialorder %v1004_v48, inf  ;;  %v1016_v1 = vand.u32 2147483648, %v1004_v48  ;;  %vm1015_vm5 = vcmp.eq.f32.partialorder %v1004_v48, 0.0 }
 0x1e8   : > { %v996_v53 = vpop.xlane.xlu1 %995 }
 0x1e9   : > { %v2250_v54 = vpop.eup %2249  ;;  %v1005_v55 = vmul.f32 %v2943_v38, %v996_v53 }
 0x1ea   : > { %v1007_v56 = vmul.f32 %v2250_v54, %v1004_v48 }
 0x1eb   : > { %2251 = vrsqrt.f32 %v1005_v55  ;;  %vm1025_vm6 = vcmp.eq.f32.partialorder %v1005_v55, inf  ;;  %v1028_v9 = vand.u32 2147483648, %v1005_v55  ;;  %vm1027_vm7 = vcmp.eq.f32.partialorder %v1005_v55, 0.0 }
 0x1ec   : > { %v1008_v57 = vmul.f32 %v2250_v54, %v1007_v56 }
 0x1ee   : > { %v1009_v58 = vmul.f32 0.5, %v1008_v57 }
 0x1f0   : > { %v1010_v59 = vsub.f32 1.5, %v1009_v58 }
 0x1f1   : > { %v2252_v60 = vpop.eup %2251 }
 0x1f2   : > { %v1011_v61 = vmul.f32 %v2250_v54, %v1010_v59  ;;  %v1019_v62 = vmul.f32 %v2252_v60, %v1005_v55  ;;  %v2240_v59 = vld [vmem:[%s3199_s26 + $0x1] ss:$0 sm:$0xff] }
 0x1f4   : > { %v1012_v63 = vmul.f32 %v1011_v61, %v1004_v48  ;;  %v1020_v0 = vmul.f32 %v2252_v60, %v1019_v62 }
 0x1f6   : > { %v1014_v2 = vsel %vm1013_vm4, %v1004_v48, %v1012_v63  ;;  %v1021_v3 = vmul.f32 0.5, %v1020_v0 }
 0x1f7   : > { %v1017_v4 = vsel %vm1015_vm5, %v1016_v1, %v1014_v2 }
 0x1f8   : > { %v1022_v5 = vsub.f32 1.5, %v1021_v3  ;;  %v1030_v6 = vadd.f32 1e-06, %v1017_v4 }
 0x1fa   : > { %v1023_v7 = vmul.f32 %v2252_v60, %v1022_v5  ;;  %2253 = vrcp.f32 %v1030_v6  ;;  %v1043_v18 = vand.u32 2147483648, %v1030_v6  ;;  %v1041_v20 = vand.u32 2147483647, %v1030_v6 }
 0x1fb   : > { %vm1037_vm9 = vweird.f32 %v1030_v6 }
 0x1fc   : > { %v1024_v8 = vmul.f32 %v1023_v7, %v1005_v55  ;;  %v1044_v25 = vor.u32 1.1754944e-38, %v1043_v18  ;;  %vm1042_vm11 = vcmp.eq.f32.partialorder %v1041_v20, 8.507059e+37 }
 0x1fe   : > { %v1026_v10 = vsel %vm1025_vm6, %v1005_v55, %v1024_v8  ;;  %v2239_v55 = vld [vmem:[%s3199_s26] ss:$0 sm:$0xff] }
 0x1ff   : > { %v1029_v12 = vsel %vm1027_vm7, %v1028_v9, %v1026_v10 }
 0x200   : > { %v2254_v14 = vpop.eup %2253  ;;  %v1031_v15 = vadd.f32 1e-06, %v1029_v12 }
 0x201   : > { %v1033_v16 = vmul.f32 %v2254_v14, %v1030_v6  ;;  %vm1038_vm8 = vweird.f32 %v2254_v14 }
 0x202   : > { %2255 = vrcp.f32 %v1031_v15  ;;  %vm1039_vm10 = vmor %vm1037_vm9, %vm1038_vm8  ;;  %v1058_v34 = vand.u32 2147483648, %v1031_v15  ;;  %v1056_v37 = vand.u32 2147483647, %v1031_v15  ;;  %vm1052_vm13 = vweird.f32 %v1031_v15 }
 0x203   : > { %v1034_v17 = vsub.f32 1.0, %v1033_v16 }
 0x204   : > { %v1059_v41 = vor.u32 1.1754944e-38, %v1058_v34  ;;  %vm1057_vm15 = vcmp.eq.f32.partialorder %v1056_v37, 8.507059e+37 }
 0x205   : > { %v1035_v19 = vmul.f32 %v2254_v14, %v1034_v17 }
 0x207   : > { %v1036_v22 = vadd.f32 %v2254_v14, %v1035_v19 }
 0x208   : > { %v2256_v23 = vpop.eup %2255 }
 0x209   : > { %v1040_v26 = vsel %vm1039_vm10, %v2254_v14, %v1036_v22  ;;  %v1048_v28 = vmul.f32 %v2256_v23, %v1031_v15  ;;  %vm1053_vm12 = vweird.f32 %v2256_v23 }
 0x20a   : > { %v1045_v30 = vsel %vm1042_vm11, %v1044_v25, %v1040_v26  ;;  %vm1054_vm14 = vmor %vm1052_vm13, %vm1053_vm12 }
 0x20b   : > { %v1046_v31 = vmul.f32 %v1045_v30, %v2931_v24  ;;  %v1049_v33 = vsub.f32 1.0, %v1048_v28 }
 0x20d   : > { %v1065_v35 = vmul.f32 %v2237_v27, %v1046_v31  ;;  %v1050_v36 = vmul.f32 %v2256_v23, %v1049_v33 }
 0x20f   : > { %v1070_v39 = vadd.f32 %v2238_v32, %v1065_v35  ;;  %v1051_v40 = vadd.f32 %v2256_v23, %v1050_v36 }
 0x211   : > { %2081 = vmatmul.msk.f32.vlgmr.msra.gmra.mxu0 %vm971_vm1, %v1070_v39  ;;  %2083 = vmatmul.msk.f32.vlgmr.msra.gmra.mxu1 %vm971_vm1, %v1070_v39  ;;  %v1055_v42 = vsel %vm1054_vm14, %v2256_v23, %v1051_v40 }
 0x212   : > { %2085 = vmatmul.msk.f32.vlgmr.msra.gmra.mxu2 %vm971_vm1, %v1070_v39  ;;  %v1060_v24 = vsel %vm1057_vm15, %v1059_v41, %v1055_v42 }
 0x213   : > { %v1061_v43 = vmul.f32 %v1060_v24, %v2938_v29 }
 0x215   : > { %v1066_v44 = vmul.f32 %v2237_v27, %v1061_v43 }
 0x217   : > { %v1071_v45 = vadd.f32 %v2238_v32, %v1066_v44 }
 0x219   : > { %2082 = vmatmul.msk.f32.gmra.mxu0 %vm971_vm1, %v1071_v45  ;;  %2084 = vmatmul.msk.f32.gmra.mxu1 %vm971_vm1, %v1071_v45 }
 0x21a   : > { %2086 = vmatmul.msk.f32.gmra.mxu2 %vm971_vm1, %v1071_v45 }
 0x28e   : > { %v1099_v46 = vpop.f32.mrf.mxu0  ;;  %v1126_v47 = vpop.f32.mrf.mxu1 }
 0x28f   : > { %1317 = vrot.lane.b32.xlu2 %v1126_v47, %s2604_s12  ;;  %2087 = vmatpush.xpose.msk.msrb.mxu0 %vm1165_vm0, %v1126_v47 }
 0x292   : > { %2088 = vmatmul.msk.f32.vlgmr.msrb.gmra.mxu0 %vm1165_vm0, %v1099_v46 }
 0x295   : > { %v1153_v48 = vpop.f32.mrf.mxu2 }
 0x296   : > { %v1102_v29 = vpop.f32.mrf.mxu0  ;;  %v1129_v49 = vpop.f32.mrf.mxu1 }
 0x297   : > { %1315 = vrot.lane.b32.xlu2 %v1099_v46, %s2604_s12  ;;  %1345 = vrot.lane.b32.xlu0 %v1129_v49, %s2604_s12 }
 0x298   : > { %2089 = vmatpush.xpose.msk.msra.mxu3 %vm1165_vm0, %v1129_v49  ;;  %1343 = vrot.lane.b32.xlu1 %v1102_v29, %s2604_s12 }
 0x29b   : > { %2090 = vmatmul.msk.f32.vlgmr.msra.gmra.mxu3 %vm1165_vm0, %v1102_v29 }
 0x29c   : > { %1285 = vmatpush.msrb.mxu3 %v1153_v48 }
 0x29d   : > { %v1156_v50 = vpop.f32.mrf.mxu2 }
 0x29e   : > { %1308 = vmatpush.msra.mxu0 %v1156_v50 }
 0x2e9   : > { %v1318_v51 = vpop.permute.xlu2 %1317 }
 0x2ea   : > { %2093 = vmatpush.xpose.msk.msrb.mxu1 %vm1165_vm0, %v1318_v51 }
 0x2f1   : > { %v1316_v52 = vpop.permute.xlu2 %1315 }
 0x2f2   : > { %2094 = vmatmul.msk.f32.vlgmr.msrb.gmra.mxu1 %vm1165_vm0, %v1316_v52 }
 0x309   : > { %v1346_v53 = vpop.permute.xlu0 %1345 }
 0x30a   : > { %2095 = vmatpush.xpose.msk.msrb.mxu2 %vm1165_vm0, %v1346_v53  ;;  %v1344_v54 = vpop.permute.xlu1 %1343 }
 0x30d   : > { %2096 = vmatmul.msk.f32.vlgmr.msrb.gmra.mxu2 %vm1165_vm0, %v1344_v54 }
 0x30f   : > { %v1189_v56 = vpop.f32.mrf.mxu0 }
 0x310   : > { %v1190_v57 = vadd.f32 %v2239_v55, %v1189_v56 }
 0x312   : > { %v1219_v58 = vsel %vm1218_vm2, %v1190_v57, -inf }
 0x313   : > { %1220 = vmax.xlane.f32.xlu2 %v1219_v58 }
 0x31e   : > { %v1215_v60 = vpop.f32.mrf.mxu3 }
 0x31f   : > { %v1216_v61 = vadd.f32 %v2240_v59, %v1215_v60 }
 0x321   : > { %v1222_v62 = vsel %vm1218_vm2, %v1216_v61, -inf }
 0x322   : > { %1223 = vmax.xlane.f32.xlu1 %v1222_v62 }
 0x33b   : > { %1420 = vrot.lane.b32.xlu1 %v1153_v48, %s2604_s12 }
 0x36f   : > { %v1340_v63 = vpop.f32.mrf.mxu1 }
 0x370   : > { %v1341_v0 = vadd.f32 %v2239_v55, %v1340_v63 }
 0x372   : > { %v1371_v1 = vsel %vm1218_vm2, %v1341_v0, -inf }
 0x373   : > { %1372 = vmax.xlane.f32.xlu0 %v1371_v1 }
 0x386   : > { %v1221_v2 = vpop.xlane.xlu2 %1220 }
 0x387   : > { %v1225_v3 = vsub.f32 %v1190_v57, %v1221_v2 }
 0x389   : > { %v1227_v4 = vmul.f32 1.442695, %v1225_v3 }
 0x38b   : > { %2257 = vpow2.f32 %v1227_v4 }
 0x390   : > { %v1368_v5 = vpop.f32.mrf.mxu2 }
 0x391   : > { %v1369_v6 = vadd.f32 %v2240_v59, %v1368_v5  ;;  %v2258_v10 = vpop.eup %2257 }
 0x392   : > { %v1231_v14 = vsel %vm1218_vm2, %v2258_v10, 0.0 }
 0x393   : > { %v1374_v7 = vsel %vm1218_vm2, %v1369_v6, -inf }
 0x394   : > { %1375 = vmax.xlane.f32.xlu2 %v1374_v7 }
 0x395   : > { %v1224_v8 = vpop.xlane.xlu1 %1223 }
 0x396   : > { %v1226_v9 = vsub.f32 %v1216_v61, %v1224_v8 }
 0x398   : > { %v1229_v12 = vmul.f32 1.442695, %v1226_v9 }
 0x39a   : > { %2259 = vpow2.f32 %v1229_v12 }
 0x39c   : > { %1232 = vadd.xlane.f32.xlu2 %v1231_v14 }
 0x3a0   : > { %v2260_v15 = vpop.eup %2259 }
 0x3a1   : > { %v1234_v16 = vsel %vm1218_vm2, %v2260_v15, 0.0 }
 0x3a2   : > { %1235 = vadd.xlane.f32.xlu0 %v1234_v16 }
 0x3ad   : > { %v1421_v17 = vpop.permute.xlu1 %1420 }
 0x3ae   : > { %1441 = vmatpush.msra.mxu3 %v1421_v17 }
 0x3b6   : > { %1447 = vrot.lane.b32.xlu0 %v1156_v50, %s2604_s12 }
 0x3e6   : > { %v1373_v18 = vpop.xlane.xlu0 %1372 }
 0x3e7   : > { %v1377_v19 = vsub.f32 %v1341_v0, %v1373_v18 }
 0x3e9   : > { %v1379_v20 = vmul.f32 1.442695, %v1377_v19 }
 0x3eb   : > { %2261 = vpow2.f32 %v1379_v20 }
 0x3f1   : > { %v2997_v22 = vpop.eup %2261 }
 0x3f2   : > { %v1383_v23 = vsel %vm1218_vm2, %v2997_v22, 0.0 }
 0x3f3   : > { %1384 = vadd.xlane.f32.xlu2 %v1383_v23  ;;  %v1488_v23 = vld [vmem:[%s2868_s16 + $0x10] sm:$0xff] }
 0x407   : > { %v1376_v25 = vpop.xlane.xlu2 %1375 }
 0x408   : > { %v1378_v26 = vsub.f32 %v1369_v6, %v1376_v25  ;;  %v1487_v25 = vld [vmem:[%s2868_s16 + $0x8] sm:$0xff] }
 0x40a   : > { %v1381_v27 = vmul.f32 1.442695, %v1378_v26  ;;  %v1486_v26 = vld [vmem:[%s2868_s16] sm:$0xff] }
 0x40c   : > { %2263 = vpow2.f32 %v1381_v27 }
 0x40f   : > { %v1233_v28 = vpop.xlane.xlu2 %1232 }
 0x410   : > { %2265 = vrcp.f32 %v1233_v28  ;;  %v1248_v36 = vand.u32 2147483648, %v1233_v28  ;;  %v1246_v39 = vand.u32 2147483647, %v1233_v28  ;;  %vm1242_vm4 = vweird.f32 %v1233_v28 }
 0x412   : > { %v3001_v30 = vpop.eup %2263  ;;  %v1249_v24 = vor.u32 1.1754944e-38, %v1248_v36  ;;  %vm1247_vm6 = vcmp.eq.f32.partialorder %v1246_v39, 8.507059e+37 }
 0x413   : > { %v1386_v31 = vsel %vm1218_vm2, %v3001_v30, 0.0 }
 0x414   : > { %1387 = vadd.xlane.f32.xlu2 %v1386_v31 }
 0x415   : > { %v1236_v32 = vpop.xlane.xlu0 %1235 }
 0x416   : > { %v2266_v33 = vpop.eup %2265  ;;  %2267 = vrcp.f32 %v1236_v32  ;;  %v1262_v45 = vand.u32 2147483648, %v1236_v32  ;;  %v1260_v48 = vand.u32 2147483647, %v1236_v32  ;;  %vm1256_vm8 = vweird.f32 %v1236_v32 }
 0x417   : > { %v1238_v34 = vmul.f32 %v2266_v33, %v1233_v28  ;;  %vm1243_vm3 = vweird.f32 %v2266_v33 }
 0x418   : > { %vm1244_vm5 = vmor %vm1242_vm4, %vm1243_vm3  ;;  %v1263_v50 = vor.u32 1.1754944e-38, %v1262_v45  ;;  %vm1261_vm10 = vcmp.eq.f32.partialorder %v1260_v48, 8.507059e+37  ;;  %v1610_v48 = vld [vmem:[%s2916_s17 + $0x8] sm:$0xff] }
 0x419   : > { %v1239_v35 = vsub.f32 1.0, %v1238_v34 }
 0x41b   : > { %v1240_v37 = vmul.f32 %v2266_v33, %v1239_v35 }
 0x41c   : > { %v2268_v40 = vpop.eup %2267 }
 0x41d   : > { %v1241_v41 = vadd.f32 %v2266_v33, %v1240_v37  ;;  %v1252_v42 = vmul.f32 %v2268_v40, %v1236_v32  ;;  %vm1257_vm7 = vweird.f32 %v2268_v40 }
 0x41e   : > { %vm1258_vm9 = vmor %vm1256_vm8, %vm1257_vm7 }
 0x41f   : > { %v1253_v43 = vsub.f32 1.0, %v1252_v42  ;;  %v1245_v44 = vsel %vm1244_vm5, %v2266_v33, %v1241_v41 }
 0x420   : > { %v1250_v46 = vsel %vm1247_vm6, %v1249_v24, %v1245_v44 }
 0x421   : > { %v1254_v47 = vmul.f32 %v2268_v40, %v1253_v43  ;;  %v1265_v29 = vmul.f32 %v2258_v10, %v1250_v46  ;;  %v1612_v46 = vld [vmem:[%s2916_s17 + $0x18] sm:$0xff] }
 0x422   : > { %1635 = vmatpush.msra.mxu2 %v1612_v46 }
 0x423   : > { %v1255_v49 = vadd.f32 %v2268_v40, %v1254_v47  ;;  %2091 = vmatmul.msk.f32.vlgmr.msrb.gmra.mxu3 %vm1218_vm2, %v1265_v29  ;;  %v1611_v47 = vld [vmem:[%s2916_s17 + $0x10] sm:$0xff]  ;;  %v1609_v29 = vld [vmem:[%s2916_s17] sm:$0xff] }
 0x424   : > { %1636 = vmatpush.msra.mxu2 %v1611_v47 }
 0x425   : > { %v1259_v51 = vsel %vm1258_vm9, %v2268_v40, %v1255_v49 }
 0x426   : > { %v1264_v52 = vsel %vm1261_vm10, %v1263_v50, %v1259_v51  ;;  %1637 = vmatpush.msra.mxu2 %v1610_v48 }
 0x427   : > { %v1266_v53 = vmul.f32 %v2260_v15, %v1264_v52 }
 0x428   : > { %v1448_v54 = vpop.permute.xlu0 %1447  ;;  %1638 = vmatpush.msra.mxu2 %v1609_v29 }
 0x429   : > { %2092 = vmatmul.msk.f32.vlgmr.msra.gmra.mxu0 %vm1218_vm2, %v1266_v53 }
 0x42a   : > { %1468 = vmatpush.msrb.mxu0 %v1448_v54 }
 0x466   : > { %v1385_v55 = vpop.xlane.xlu2 %1384 }
 0x467   : > { %2269 = vrcp.f32 %v1385_v55  ;;  %v1400_v59 = vand.u32 2147483648, %v1385_v55  ;;  %v1398_v61 = vand.u32 2147483647, %v1385_v55  ;;  %vm1394_vm12 = vweird.f32 %v1385_v55 }
 0x469   : > { %v1401_v63 = vor.u32 1.1754944e-38, %v1400_v59  ;;  %vm1399_vm14 = vcmp.eq.f32.partialorder %v1398_v61, 8.507059e+37 }
 0x46d   : > { %v2270_v56 = vpop.eup %2269 }
 0x46e   : > { %v1390_v57 = vmul.f32 %v2270_v56, %v1385_v55  ;;  %vm1395_vm11 = vweird.f32 %v2270_v56 }
 0x46f   : > { %vm1396_vm13 = vmor %vm1394_vm12, %vm1395_vm11 }
 0x470   : > { %v1391_v58 = vsub.f32 1.0, %v1390_v57 }
 0x472   : > { %v1392_v60 = vmul.f32 %v2270_v56, %v1391_v58 }
 0x474   : > { %v1393_v62 = vadd.f32 %v2270_v56, %v1392_v60 }
 0x476   : > { %v1397_v0 = vsel %vm1396_vm13, %v2270_v56, %v1393_v62 }
 0x477   : > { %v1402_v1 = vsel %vm1399_vm14, %v1401_v63, %v1397_v0 }
 0x478   : > { %v1417_v2 = vmul.f32 %v2997_v22, %v1402_v1  ;;  %v1489_v22 = vld [vmem:[%s2868_s16 + $0x18] sm:$0xff] }
 0x479   : > { %1508 = vmatpush.msra.mxu1 %v1489_v22 }
 0x47a   : > { %2097 = vmatmul.msk.f32.vlgmr.msra.gmra.mxu3 %vm1218_vm2, %v1417_v2 }
 0x47b   : > { %1509 = vmatpush.msra.mxu1 %v1488_v23  ;;  %v1655_v23 = vld [vmem:[%s2910_s22 + $0x38] sm:$0xff] }
 0x47c   : > { %1675 = vmatpush.msrb.mxu3 %v1655_v23 }
 0x47d   : > { %1510 = vmatpush.msra.mxu1 %v1487_v25  ;;  %v1654_v25 = vld [vmem:[%s2910_s22 + $0x30] sm:$0xff] }
 0x47e   : > { %1676 = vmatpush.msrb.mxu3 %v1654_v25 }
 0x47f   : > { %1511 = vmatpush.msra.mxu1 %v1486_v26 }
 0x487   : > { %v1388_v3 = vpop.xlane.xlu2 %1387 }
 0x488   : > { %2271 = vrcp.f32 %v1388_v3  ;;  %v1414_v7 = vand.u32 2147483648, %v1388_v3  ;;  %v1412_v9 = vand.u32 2147483647, %v1388_v3  ;;  %vm1408_vm3 = vweird.f32 %v1388_v3 }
 0x48a   : > { %v1415_v12 = vor.u32 1.1754944e-38, %v1414_v7  ;;  %vm1413_vm5 = vcmp.eq.f32.partialorder %v1412_v9, 8.507059e+37  ;;  %v2241_v7 = vld [vmem:[%s3200_s4] ss:$0 sm:$0xff] }
 0x48e   : > { %v2272_v4 = vpop.eup %2271 }
 0x48f   : > { %v1404_v5 = vmul.f32 %v2272_v4, %v1388_v3  ;;  %vm1409_vm15 = vweird.f32 %v2272_v4 }
 0x490   : > { %vm1410_vm4 = vmor %vm1408_vm3, %vm1409_vm15 }
 0x491   : > { %v1405_v6 = vsub.f32 1.0, %v1404_v5 }
 0x493   : > { %v1406_v8 = vmul.f32 %v2272_v4, %v1405_v6 }
 0x495   : > { %v1407_v10 = vadd.f32 %v2272_v4, %v1406_v8 }
 0x497   : > { %v1411_v14 = vsel %vm1410_vm4, %v2272_v4, %v1407_v10  ;;  %v2242_v10 = vld [vmem:[%s907_s3] ss:$0 sm:$0xff]  ;;  %vm1660_vm4 = vcmask 523264  }
 0x498   : > { %v1416_v15 = vsel %vm1413_vm5, %v1415_v12, %v1411_v14 }
 0x499   : > { %v1418_v16 = vmul.f32 %v3001_v30, %v1416_v15 }
 0x49b   : > { %2098 = vmatmul.msk.f32.vlgmr.msrb.gmra.mxu0 %vm1218_vm2, %v1418_v16  ;;  %vm1481_vm2 = vcmask 261248  }
 0x4a6   : > { %v1310_v17 = vpop.f32.mrf.mxu0  ;;  %v1287_v18 = vpop.f32.mrf.mxu3 }
 0x4a7   : > { %1314 = vst.msk [vmem:[#allocation2 + $0x8] sm:$0xff] %vm1165_vm0, %v1310_v17 }
 0x4a8   : > { %1313 = vst.msk [vmem:[#allocation2] sm:$0xff] %vm1165_vm0, %v1287_v18 }
 0x4fd   : > { %v1443_v19 = vpop.f32.mrf.mxu3 }
 0x4fe   : > { %1475 = vrot.lane.b32.xlu2 %v1443_v19, %s2605_s21 }
 0x518   : > { %v1470_v20 = vpop.f32.mrf.mxu0 }
 0x519   : > { %1477 = vrot.lane.b32.xlu0 %v1470_v20, %s2605_s21 }
 0x558   : > { %v1476_v27 = vpop.permute.xlu2 %1475 }
 0x559   : > { %1482 = vst.msk [vmem:[#allocation2] sm:$0xff] %vm1481_vm2, %v1476_v27  ;;  %v1653_v27 = vld [vmem:[%s2910_s22 + $0x28] sm:$0xff] }
 0x55a   : > { %1677 = vmatpush.msrb.mxu3 %v1653_v27 }
 0x560   : > { %v1484_v28 = vld [vmem:[#allocation2] sm:$0xff] }
 0x561   : > { %2099 = vmatmul.msk.f32.vlgmr.msra.gmra.mxu1 %vm971_vm1, %v1484_v28 }
 0x58b   : > { %v1478_v30 = vpop.permute.xlu0 %1477 }
 0x58c   : > { %1483 = vst.msk [vmem:[#allocation2 + $0x8] sm:$0xff] %vm1481_vm2, %v1478_v30 }
 0x593   : > { %v1485_v31 = vld [vmem:[#allocation2 + $0x8] sm:$0xff] }
 0x594   : > { %2100 = vmatmul.msk.f32.gmra.mxu1 %vm971_vm1, %v1485_v31  ;;  %v1652_v31 = vld [vmem:[%s2910_s22 + $0x20] sm:$0xff] }
 0x595   : > { %1678 = vmatpush.msrb.mxu3 %v1652_v31 }
 0x5de   : > { %v1513_v32 = vpop.f32.mrf.mxu1 }
 0x5df   : > { %v3020_v33 = vadd.f32 %v1513_v32, %v2919_v11 }
 0x5e1   : > { %v1523_v34 = vsel %vm971_vm1, %v3020_v33, 0.0 }
 0x5e2   : > { %1524 = vadd.xlane.f32.xlu1 %v1523_v34 }
 0x611   : > { %v1516_v35 = vpop.f32.mrf.mxu1 }
 0x612   : > { %v3025_v36 = vadd.f32 %v1516_v35, %v2923_v13  ;;  %v1651_v35 = vld [vmem:[%s2910_s22 + $0x18] sm:$0xff] }
 0x613   : > { %1679 = vmatpush.msrb.mxu3 %v1651_v35 }
 0x614   : > { %v1526_v37 = vsel %vm971_vm1, %v3025_v36, 0.0 }
 0x615   : > { %1527 = vadd.xlane.f32.xlu2 %v1526_v37 }
 0x655   : > { %v1525_v39 = vpop.xlane.xlu1 %1524 }
 0x656   : > { %v1529_v40 = vmul.f32 %v1525_v39, %v2927_v21 }
 0x658   : > { %v1531_v11 = vsub.f32 %v3020_v33, %v1529_v40 }
 0x65a   : > { %v1533_v41 = vmul.f32 %v1531_v11, %v1531_v11 }
 0x65c   : > { %v1535_v42 = vsel %vm971_vm1, %v1533_v41, 0.0 }
 0x65d   : > { %1536 = vadd.xlane.f32.xlu0 %v1535_v42 }
 0x688   : > { %v1528_v24 = vpop.xlane.xlu2 %1527 }
 0x689   : > { %v1530_v13 = vmul.f32 %v1528_v24, %v2927_v21 }
 0x68b   : > { %v3034_v43 = vsub.f32 %v3025_v36, %v1530_v13 }
 0x68d   : > { %v1534_v44 = vmul.f32 %v3034_v43, %v3034_v43 }
 0x68f   : > { %v1538_v45 = vsel %vm971_vm1, %v1534_v44, 0.0 }
 0x690   : > { %1539 = vadd.xlane.f32.xlu1 %v1538_v45 }
 0x6d0   : > { %v1537_v49 = vpop.xlane.xlu0 %1536 }
 0x6d1   : > { %v1541_v50 = vmul.f32 %v1537_v49, %v2943_v38  ;;  %v1650_v49 = vld [vmem:[%s2910_s22 + $0x10] sm:$0xff] }
 0x6d2   : > { %1680 = vmatpush.msrb.mxu3 %v1650_v49 }
 0x6d3   : > { %2273 = vrsqrt.f32 %v1541_v50  ;;  %vm1550_vm0 = vcmp.eq.f32.partialorder %v1541_v50, inf  ;;  %v1553_v58 = vand.u32 2147483648, %v1541_v50  ;;  %vm1552_vm6 = vcmp.eq.f32.partialorder %v1541_v50, 0.0 }
 0x6d9   : > { %v2274_v51 = vpop.eup %2273 }
 0x6da   : > { %v1544_v52 = vmul.f32 %v2274_v51, %v1541_v50 }
 0x6dc   : > { %v1545_v53 = vmul.f32 %v2274_v51, %v1544_v52  ;;  %v2243_v52 = vld [vmem:[%s910_s8] ss:$0 sm:$0xff] }
 0x6de   : > { %v1546_v54 = vmul.f32 0.5, %v1545_v53 }
 0x6e0   : > { %v1547_v55 = vsub.f32 1.5, %v1546_v54 }
 0x6e2   : > { %v1548_v56 = vmul.f32 %v2274_v51, %v1547_v55  ;;  %v1648_v51 = vld [vmem:[%s2910_s22] sm:$0xff] }
 0x6e4   : > { %v1549_v57 = vmul.f32 %v1548_v56, %v1541_v50 }
 0x6e6   : > { %v1551_v59 = vsel %vm1550_vm0, %v1541_v50, %v1549_v57  ;;  %v1649_v50 = vld [vmem:[%s2910_s22 + $0x8] sm:$0xff] }
 0x6e7   : > { %v1554_v60 = vsel %vm1552_vm6, %v1553_v58, %v1551_v59  ;;  %1681 = vmatpush.msrb.mxu3 %v1649_v50  ;;  %v2244_v58 = vld [vmem:[%s918_s19] ss:$0 sm:$0xff] }
 0x6e8   : > { %v1567_v61 = vadd.f32 1e-06, %v1554_v60 }
 0x6e9   : > { %1682 = vmatpush.msrb.mxu3 %v1648_v51 }
 0x6ea   : > { %2275 = vrcp.f32 %v1567_v61  ;;  %v1580_v1 = vand.u32 2147483648, %v1567_v61  ;;  %v1578_v3 = vand.u32 2147483647, %v1567_v61  ;;  %vm1574_vm8 = vweird.f32 %v1567_v61 }
 0x6ec   : > { %v1581_v5 = vor.u32 1.1754944e-38, %v1580_v1  ;;  %vm1579_vm10 = vcmp.eq.f32.partialorder %v1578_v3, 8.507059e+37 }
 0x6f0   : > { %v2276_v62 = vpop.eup %2275 }
 0x6f1   : > { %v1570_v63 = vmul.f32 %v2276_v62, %v1567_v61  ;;  %vm1575_vm7 = vweird.f32 %v2276_v62 }
 0x6f2   : > { %vm1576_vm9 = vmor %vm1574_vm8, %vm1575_vm7 }
 0x6f3   : > { %v1571_v0 = vsub.f32 1.0, %v1570_v63 }
 0x6f5   : > { %v1572_v2 = vmul.f32 %v2276_v62, %v1571_v0 }
 0x6f7   : > { %v1573_v4 = vadd.f32 %v2276_v62, %v1572_v2 }
 0x6f9   : > { %v1577_v6 = vsel %vm1576_vm9, %v2276_v62, %v1573_v4 }
 0x6fa   : > { %v1582_v8 = vsel %vm1579_vm10, %v1581_v5, %v1577_v6 }
 0x6fb   : > { %v1583_v9 = vmul.f32 %v1582_v8, %v1531_v11 }
 0x6fd   : > { %v1602_v12 = vmul.f32 %v2241_v7, %v1583_v9 }
 0x6ff   : > { %v1607_v14 = vadd.f32 %v2242_v10, %v1602_v12 }
 0x701   : > { %2101 = vmatmul.msk.f32.vlgmr.msra.gmra.mxu2 %vm971_vm1, %v1607_v14 }
 0x703   : > { %v1540_v15 = vpop.xlane.xlu1 %1539 }
 0x704   : > { %v1542_v16 = vmul.f32 %v1540_v15, %v2943_v38 }
 0x706   : > { %2277 = vrsqrt.f32 %v1542_v16  ;;  %vm1562_vm11 = vcmp.eq.f32.partialorder %v1542_v16, inf  ;;  %v1565_v30 = vand.u32 2147483648, %v1542_v16  ;;  %vm1564_vm12 = vcmp.eq.f32.partialorder %v1542_v16, 0.0 }
 0x70c   : > { %v2278_v17 = vpop.eup %2277 }
 0x70d   : > { %v1556_v18 = vmul.f32 %v2278_v17, %v1542_v16 }
 0x70f   : > { %v1557_v19 = vmul.f32 %v2278_v17, %v1556_v18 }
 0x711   : > { %v1558_v20 = vmul.f32 0.5, %v1557_v19 }
 0x713   : > { %v1559_v22 = vsub.f32 1.5, %v1558_v20 }
 0x715   : > { %v1560_v26 = vmul.f32 %v2278_v17, %v1559_v22 }
 0x717   : > { %v1561_v28 = vmul.f32 %v1560_v26, %v1542_v16 }
 0x719   : > { %v1563_v32 = vsel %vm1562_vm11, %v1542_v16, %v1561_v28 }
 0x71a   : > { %v1566_v34 = vsel %vm1564_vm12, %v1565_v30, %v1563_v32 }
 0x71b   : > { %v1568_v37 = vadd.f32 1e-06, %v1566_v34 }
 0x71d   : > { %2279 = vrcp.f32 %v1568_v37  ;;  %v1595_v41 = vand.u32 2147483648, %v1568_v37  ;;  %v1593_v24 = vand.u32 2147483647, %v1568_v37  ;;  %vm1589_vm14 = vweird.f32 %v1568_v37 }
 0x71f   : > { %v1596_v44 = vor.u32 1.1754944e-38, %v1595_v41  ;;  %vm1594_vm3 = vcmp.eq.f32.partialorder %v1593_v24, 8.507059e+37 }
 0x723   : > { %v2280_v39 = vpop.eup %2279 }
 0x724   : > { %v1585_v40 = vmul.f32 %v2280_v39, %v1568_v37  ;;  %vm1590_vm13 = vweird.f32 %v2280_v39 }
 0x725   : > { %vm1591_vm15 = vmor %vm1589_vm14, %vm1590_vm13 }
 0x726   : > { %v1586_v11 = vsub.f32 1.0, %v1585_v40 }
 0x728   : > { %v1587_v42 = vmul.f32 %v2280_v39, %v1586_v11 }
 0x72a   : > { %v1588_v13 = vadd.f32 %v2280_v39, %v1587_v42 }
 0x72c   : > { %v1592_v45 = vsel %vm1591_vm15, %v2280_v39, %v1588_v13 }
 0x72d   : > { %v1597_v46 = vsel %vm1594_vm3, %v1596_v44, %v1592_v45 }
 0x72e   : > { %v1598_v47 = vmul.f32 %v1597_v46, %v3034_v43 }
 0x730   : > { %v1603_v48 = vmul.f32 %v2241_v7, %v1598_v47 }
 0x732   : > { %v1608_v29 = vadd.f32 %v2242_v10, %v1603_v48 }
 0x734   : > { %2102 = vmatmul.msk.f32.gmra.mxu2 %vm971_vm1, %v1608_v29 }
 0x784   : > { %v1640_v53 = vpop.f32.mrf.mxu2 }
 0x785   : > { %v1641_v54 = vadd.f32 %v2243_v52, %v1640_v53 }
 0x787   : > { %v1646_v43 = vmax.f32 %v1641_v54, 0.0 }
 0x789   : > { %2103 = vmatmul.msk.f32.vlgmr.msrb.gmra.mxu3 %vm1660_vm4, %v1646_v43 }
 0x7b7   : > { %v1643_v55 = vpop.f32.mrf.mxu2 }
 0x7b8   : > { %v1644_v56 = vadd.f32 %v2243_v52, %v1643_v55 }
 0x7ba   : > { %v1647_v57 = vmax.f32 %v1644_v56, 0.0 }
 0x7bc   : > { %2104 = vmatmul.msk.f32.gmra.mxu3 %vm1660_vm4, %v1647_v57 }
 0x80c   : > { %v1684_v59 = vpop.f32.mrf.mxu3 }
 0x80d   : > { %v1685_v60 = vadd.f32 %v2244_v58, %v1684_v59 }
 0x80f   : > { %v1690_v61 = vadd.f32 %v1685_v60, %v3020_v33 }
 0x83e   : > { %1695 = sbr.rel (%p2105_p3) target bundleno = 2117 (0x845), region = 128 }
 0x83f   : > { %v1687_v62 = vpop.f32.mrf.mxu3 }
 0x840   : > { %v1688_v63 = vadd.f32 %v2244_v58, %v1687_v62 }
 0x842   : > { %v1691_v0 = vadd.f32 %v1688_v63, %v3025_v36 }
 0x843   : > { %1696 = vst.msk [vmem:[#allocation15] sm:$0xff] %vm971_vm1, %v1690_v61 }
 0x844   : > { %1697 = vst.msk [vmem:[#allocation15 + $0x8] sm:$0xff] %vm971_vm1, %v1691_v0 }
 0x845 PF: > { %p2106_p4 = scmp.ne.s32.totalorder %s2587_s30, 1 }
 0x846   : > { %s3204_s8 = sld [smem:[#allocation41_spill]] (!%p2106_p4) }
 0x847   : > { %1701 = sbr.rel (%p2106_p4) target bundleno = 2421 (0x975), region = 132  ;;  %s3205_s19 = sld [smem:[#allocation42_spill]] (!%p2106_p4) }
 0x84c   : > { %v1704_v1 = vsel %vm971_vm1, %v1690_v61, 0.0  ;;  %v1707_v33 = vsel %vm971_vm1, %v1691_v0, 0.0  ;;  %v2281_v50 = vld [vmem:[%s3204_s8] ss:$0 sm:$0xff] }
 0x84d   : > { %1705 = vadd.xlane.f32.xlu0 %v1704_v1  ;;  %v2282_v54 = vld [vmem:[%s3205_s19] ss:$0 sm:$0xff] }
 0x855   : > { %1708 = vadd.xlane.f32.xlu0 %v1707_v33 }
 0x8c0   : > { %v1706_v2 = vpop.xlane.xlu0 %1705 }
 0x8c1   : > { %v1710_v36 = vmul.f32 %v1706_v2, %v2927_v21 }
 0x8c3   : > { %v1712_v3 = vsub.f32 %v1690_v61, %v1710_v36 }
 0x8c5   : > { %v1714_v4 = vmul.f32 %v1712_v3, %v1712_v3 }
 0x8c7   : > { %v1716_v5 = vsel %vm971_vm1, %v1714_v4, 0.0 }
 0x8c8   : > { %1717 = vadd.xlane.f32.xlu1 %v1716_v5  ;;  %v1709_v6 = vpop.xlane.xlu0 %1708 }
 0x8c9   : > { %v1711_v7 = vmul.f32 %v1709_v6, %v2927_v21 }
 0x8cb   : > { %v3087_v8 = vsub.f32 %v1691_v0, %v1711_v7 }
 0x8cd   : > { %v1715_v9 = vmul.f32 %v3087_v8, %v3087_v8 }
 0x8cf   : > { %v1719_v10 = vsel %vm971_vm1, %v1715_v9, 0.0 }
 0x8d0   : > { %1720 = vadd.xlane.f32.xlu1 %v1719_v10 }
 0x93b   : > { %v1718_v12 = vpop.xlane.xlu1 %1717 }
 0x93c   : > { %v1722_v14 = vmul.f32 %v1718_v12, %v2943_v38 }
 0x93e   : > { %2283 = vrsqrt.f32 %v1722_v14  ;;  %vm1731_vm5 = vcmp.eq.f32.partialorder %v1722_v14, inf  ;;  %v1734_v28 = vand.u32 2147483648, %v1722_v14  ;;  %vm1733_vm2 = vcmp.eq.f32.partialorder %v1722_v14, 0.0 }
 0x943   : > { %v1721_v15 = vpop.xlane.xlu1 %1720 }
 0x944   : > { %v2284_v16 = vpop.eup %2283  ;;  %v1723_v17 = vmul.f32 %v1721_v15, %v2943_v38 }
 0x945   : > { %v1725_v18 = vmul.f32 %v2284_v16, %v1722_v14 }
 0x946   : > { %2285 = vrsqrt.f32 %v1723_v17  ;;  %vm1743_vm0 = vcmp.eq.f32.partialorder %v1723_v17, inf  ;;  %v1746_v39 = vand.u32 2147483648, %v1723_v17  ;;  %vm1745_vm6 = vcmp.eq.f32.partialorder %v1723_v17, 0.0 }
 0x947   : > { %v1726_v19 = vmul.f32 %v2284_v16, %v1725_v18 }
 0x949   : > { %v1727_v21 = vmul.f32 0.5, %v1726_v19 }
 0x94b   : > { %v1728_v20 = vsub.f32 1.5, %v1727_v21 }
 0x94c   : > { %v2286_v22 = vpop.eup %2285 }
 0x94d   : > { %v1729_v23 = vmul.f32 %v2284_v16, %v1728_v20  ;;  %v1737_v25 = vmul.f32 %v2286_v22, %v1723_v17 }
 0x94f   : > { %v1730_v26 = vmul.f32 %v1729_v23, %v1722_v14  ;;  %v1738_v27 = vmul.f32 %v2286_v22, %v1737_v25 }
 0x951   : > { %v1732_v30 = vsel %vm1731_vm5, %v1722_v14, %v1730_v26  ;;  %v1739_v31 = vmul.f32 0.5, %v1738_v27 }
 0x952   : > { %v1735_v32 = vsel %vm1733_vm2, %v1734_v28, %v1732_v30 }
 0x953   : > { %v1748_v34 = vadd.f32 1e-06, %v1735_v32  ;;  %v1740_v35 = vsub.f32 1.5, %v1739_v31 }
 0x955   : > { %2287 = vrcp.f32 %v1748_v34  ;;  %v1741_v38 = vmul.f32 %v2286_v22, %v1740_v35  ;;  %v1761_v44 = vand.u32 2147483648, %v1748_v34  ;;  %v1759_v46 = vand.u32 2147483647, %v1748_v34 }
 0x956   : > { %vm1755_vm8 = vweird.f32 %v1748_v34 }
 0x957   : > { %v1742_v37 = vmul.f32 %v1741_v38, %v1723_v17  ;;  %v1762_v48 = vor.u32 1.1754944e-38, %v1761_v44  ;;  %vm1760_vm10 = vcmp.eq.f32.partialorder %v1759_v46, 8.507059e+37 }
 0x959   : > { %v1744_v40 = vsel %vm1743_vm0, %v1723_v17, %v1742_v37 }
 0x95a   : > { %v1747_v41 = vsel %vm1745_vm6, %v1746_v39, %v1744_v40 }
 0x95b   : > { %v2288_v11 = vpop.eup %2287  ;;  %v1749_v24 = vadd.f32 1e-06, %v1747_v41 }
 0x95c   : > { %v1751_v42 = vmul.f32 %v2288_v11, %v1748_v34  ;;  %vm1756_vm7 = vweird.f32 %v2288_v11 }
 0x95d   : > { %2289 = vrcp.f32 %v1749_v24  ;;  %vm1757_vm9 = vmor %vm1755_vm8, %vm1756_vm7  ;;  %v1776_v56 = vand.u32 2147483648, %v1749_v24  ;;  %v1774_v58 = vand.u32 2147483647, %v1749_v24  ;;  %vm1770_vm12 = vweird.f32 %v1749_v24 }
 0x95e   : > { %v1752_v13 = vsub.f32 1.0, %v1751_v42 }
 0x95f   : > { %v1777_v61 = vor.u32 1.1754944e-38, %v1776_v56  ;;  %vm1775_vm14 = vcmp.eq.f32.partialorder %v1774_v58, 8.507059e+37 }
 0x960   : > { %v1753_v45 = vmul.f32 %v2288_v11, %v1752_v13 }
 0x962   : > { %v1754_v47 = vadd.f32 %v2288_v11, %v1753_v45 }
 0x963   : > { %v2290_v29 = vpop.eup %2289 }
 0x964   : > { %v1758_v49 = vsel %vm1757_vm9, %v2288_v11, %v1754_v47  ;;  %v1766_v52 = vmul.f32 %v2290_v29, %v1749_v24  ;;  %vm1771_vm11 = vweird.f32 %v2290_v29 }
 0x965   : > { %v1763_v51 = vsel %vm1760_vm10, %v1762_v48, %v1758_v49  ;;  %vm1772_vm13 = vmor %vm1770_vm12, %vm1771_vm11 }
 0x966   : > { %v1764_v53 = vmul.f32 %v1763_v51, %v1712_v3  ;;  %v1767_v43 = vsub.f32 1.0, %v1766_v52 }
 0x968   : > { %v1783_v55 = vmul.f32 %v2281_v50, %v1764_v53  ;;  %v1768_v57 = vmul.f32 %v2290_v29, %v1767_v43 }
 0x96a   : > { %v1788_v59 = vadd.f32 %v2282_v54, %v1783_v55  ;;  %v1769_v60 = vadd.f32 %v2290_v29, %v1768_v57 }
 0x96c   : > { %1790 = vst.msk [vmem:[#allocation15] sm:$0xff] %vm971_vm1, %v1788_v59  ;;  %v1773_v62 = vsel %vm1772_vm13, %v2290_v29, %v1769_v60 }
 0x96d   : > { %v1778_v63 = vsel %vm1775_vm14, %v1777_v61, %v1773_v62 }
 0x96e   : > { %v1779_v0 = vmul.f32 %v1778_v63, %v3087_v8 }
 0x970   : > { %v1784_v1 = vmul.f32 %v2281_v50, %v1779_v0 }
 0x972   : > { %v1789_v33 = vadd.f32 %v2282_v54, %v1784_v1 }
 0x974   : > { %1791 = vst.msk [vmem:[#allocation15 + $0x8] sm:$0xff] %vm971_vm1, %v1789_v33 }
 0x975 PF: > { %p2175_p5 = scmp.eq.s32.totalorder %s2735_s1, 1  ;;  %s3206_s0 = sld [smem:[#allocation43_spill]] }
 0x976   : > { %s2606_s14 = smov [#allocation15]   ;;  %s2607_s18 = smov 128  }
 0x977   : > { %s1800_s23 = sshll.u32 %s2606_s14, 4  ;;  %s2608_s25 = smov 8   ;;  %s1801_s23 = int_to_ptr.vmem [resolvable:$true] %s1800_s23 }
 0x97b   : > { %s1802_s12 = sshll.u32 %s3206_s0, 4  ;;  %s1803_s12 = int_to_ptr.hbm [resolvable:$true] %s1802_s12 }
 0x97c   : > { %2142 = dma.vmem_to_hbm [thread:$0]  (%p2175_p5), %s1801_s23, 256, %s1803_s12, [#allocation5], %s2607_s18, %s2607_s18, %s2608_s25  }
 0x97d   : > { %2570 = dma.done.wait (%p2175_p5), [#allocation5], 256  }
 0x97e   : > { %2572 = vsyncadd (%p2175_p5), [#allocation5], 4294967040 }
 0x97f PF: > { %s3207_s21 = sld [smem:[#allocation23_spill]]  ;;  %s3212_s27 = smov %s2579_s28 }
 0x980   : > { %s3208_s16 = sld [smem:[#allocation21_spill]] }
 0x981   : > { %s3209_s29 = sld [smem:[#allocation25_spill]] }
 0x982   : > { %s3210_s30 = sld [smem:[#allocation22_spill]] }
 0x983   : > { %s3211_s0 = sld [smem:[#allocation24_spill]] }
 0x985   : > { %s37_s19 = sadd.s32 1, %s3207_s21  }
 0x986   : > { %p34_p6 = scmp.ge.s32.totalorder %s37_s19, 4   ;;  %s3213_s28 = smov %s3208_s16 }
 0x988   :  { %36 = sbr.rel (!%p34_p6) target bundleno = 28 (0x1c), region = 218 }
 0x98d   :  { %1819 = vsyncpa [#allocation4], 1 }
 0x98e   :  { %1821 = vsyncpa [#allocation4 + $0x1], 1 }
 0x98f   :  { %1822 = vsyncpa [#allocation7], 1 }
 0x990   :  { %1823 = vsyncpa [#allocation10], 1 }
 0x991   :  { %1825 = vsyncpa [#allocation10 + $0x1], 1 }
 0x992   :  { %1826 = vsyncpa [#allocation13], 1 }
 0x993   :  { %1828 = vsyncpa [#allocation13 + $0x1], 1 }
 0x994   :  { %1829 = vsyncpa [#allocation5], 1 }
 0x995   :  { %1831 = vsyncpa [#allocation5 + $0x1], 1 }

</bundles_post_ra>
